<compile_context>
chip_gen: v5e
topology: v5e:2x2
jax: 0.10.0
libtpu: 0.0.40
codegen_flags: <defaults>
</compile_context>

<pallas_src>
import functools
import math

import jax
import jax.numpy as jnp
from jax.experimental import pallas as pl
from jax.experimental.pallas import tpu as pltpu

# ----------------------------- model config ---------------------------------
VOCAB = 100
MAX_POS = 64
TYPE_VOCAB = 2
HIDDEN = 128          # stands in for 768 of bert-base
HEADS = 2
HEAD_DIM = HIDDEN // HEADS
LANE = 128            # TPU lane width
HD_PAD = LANE         # per-head Q/K/V/context block padded to a full lane tile
INTERMEDIATE = 256
LAYERS = 2
L1 = 64               # config.l1
NUM_CLASSES = 4       # config.num_classes
LN_EPS = 1e-12
BATCH = 2
SEQ = 8

assert HIDDEN == HEADS * HEAD_DIM


# ------------------------------ fused kernel ---------------------------------
def _bert_layer_kernel(
        # inputs (resident)
        emb_ref, maskf_ref, eg_ref, eb_ref,
        # inputs (streamed per layer)
        wqkv_ref, bqkv_ref, wo_ref, bo_ref, ln1g_ref, ln1b_ref,
        wi_ref, bi_ref, wo2_ref, bo2_ref, ln2g_ref, ln2b_ref,
        # inputs (resident: pooler + MLP head, lane-padded)
        pw_ref, pb_ref, w1_ref, b1_ref, w2_ref, b2_ref,
        # outputs (lane-dense 128-wide slabs)
        embed_ref, logits_ref,
        # scratch
        x_scr, ctx_scr,
        *, batch, seq, heads, head_dim, hd_pad, eps):
    """One transformer layer per grid step; emb-LN at l==0, head at l==last."""
    l = pl.program_id(0)
    f32 = jnp.float32
    bf16 = jnp.bfloat16
    scale = 1.0 / math.sqrt(head_dim)

    def layer_norm(v, g, b):
        mu = jnp.mean(v, axis=-1, keepdims=True)
        vc = v - mu
        var = jnp.mean(vc * vc, axis=-1, keepdims=True)
        return vc * jax.lax.rsqrt(var + eps) * g + b

    # --- embedding LayerNorm (only once, first grid step) ---
    @pl.when(l == 0)
    def _():
        x_scr[...] = layer_norm(emb_ref[...].astype(f32),
                                eg_ref[...], eb_ref[...])

    x = x_scr[...]                                       # [b*s, hidden] f32

    # additive attention mask, built in-kernel from the raw (B, S) mask
    add_mask = (1.0 - maskf_ref[...]) * -1e4             # [batch, seq] f32

    # --- fused QKV projection (bf16 weights, f32 accumulation) ---
    # layout: per head h the Q/K/V blocks each occupy a full 128-lane tile,
    # real head_dim=64 cols up front, zero padding behind -> every slice below
    # is 128-lane aligned (no relayouts).
    qkv = jnp.dot(x.astype(bf16), wqkv_ref[0],
                  preferred_element_type=f32) + bqkv_ref[0]

    # --- per-(batch, head) attention; head outputs stored straight into a
    #     lane-aligned VMEM context scratch (no concatenates) ---
    for b in range(batch):
        r0 = b * seq
        mrow = add_mask[b:b + 1, :]                      # [1, seq]
        for h in range(heads):
            c0 = h * 3 * hd_pad
            q = qkv[r0:r0 + seq, c0:c0 + hd_pad]
            k = qkv[r0:r0 + seq, c0 + hd_pad:c0 + 2 * hd_pad]
            v = qkv[r0:r0 + seq, c0 + 2 * hd_pad:c0 + 3 * hd_pad]
            s = jax.lax.dot_general(
                q, k, (((1,), (1,)), ((), ())),
                preferred_element_type=f32) * scale      # pad cols are zero
            s = s + mrow                                 # broadcast [1,S]->[S,S]
            mx = jnp.max(s, axis=-1, keepdims=True)
            p = jnp.exp(s - mx)
            denom = jnp.sum(p, axis=-1, keepdims=True)
            p = p * pl.reciprocal(denom, approx=True)
            ctx_scr[r0:r0 + seq, h * hd_pad:(h + 1) * hd_pad] = jnp.dot(
                p, v, preferred_element_type=f32)

    # attention output projection (pad rows of wo are zero) + residual + LN
    attn = jnp.dot(ctx_scr[...].astype(bf16), wo_ref[0],
                   preferred_element_type=f32) + bo_ref[0]
    x = layer_norm(attn + x, ln1g_ref[0], ln1b_ref[0])

    # FFN: intermediate GEMM + GELU + output GEMM + residual + LN
    ffn = jnp.dot(x.astype(bf16), wi_ref[0],
                  preferred_element_type=f32) + bi_ref[0]
    # TODO(synk): tanh-approx GELU; real bert-base uses exact erf GELU
    # (divergence < 1e-3).
    c = math.sqrt(2.0 / math.pi)
    ffn = 0.5 * ffn * (1.0 + jnp.tanh(c * (ffn + 0.044715 * ffn * ffn * ffn)))
    ffn_out = jnp.dot(ffn.astype(bf16), wo2_ref[0],
                      preferred_element_type=f32) + bo2_ref[0]
    x = layer_norm(ffn_out + x, ln2g_ref[0], ln2b_ref[0])
    x_scr[...] = x                                       # carry to next layer

    # --- pooler + dropout(identity) + MLP head (last grid step only) ---
    # Computed for all b*s rows (lane/sublane dense); the wrapper slices the
    # [CLS] rows and the real (un-padded) columns.
    @pl.when(l == pl.num_programs(0) - 1)
    def _():
        pooled = jnp.tanh(jnp.dot(x.astype(bf16), pw_ref[...],
                                  preferred_element_type=f32) + pb_ref[...])
        lin1 = jnp.dot(pooled.astype(bf16), w1_ref[...],
                       preferred_element_type=f32) + b1_ref[...]
        lin2 = jnp.dot(lin1.astype(bf16), w2_ref[...],
                       preferred_element_type=f32) + b2_ref[...]
        embed_ref[...] = lin1.astype(embed_ref.dtype)
        logits_ref[...] = lin2.astype(logits_ref.dtype)


def _resident_spec(shape):
    nd = len(shape)
    return pl.BlockSpec(shape, lambda l, nd=nd: (0,) * nd)


def _per_layer_spec(shape):
    nd = len(shape)
    return pl.BlockSpec((1,) + tuple(shape[1:]),
                        lambda l, nd=nd: (l,) + (0,) * (nd - 1))


# ------------------------- deterministic parameters --------------------------
def init_params(key):
    std = 0.02

    def nrm(k, shape):
        return jax.random.normal(k, shape, jnp.float32) * std

    k_we, k_pe, k_te, k_pool, k_l1, k_l2, k_layers = jax.random.split(key, 7)

    p = {
        "word_emb": nrm(k_we, (VOCAB, HIDDEN)),
        "pos_emb": nrm(k_pe, (MAX_POS, HIDDEN)),
        "type_emb": nrm(k_te, (TYPE_VOCAB, HIDDEN)),
        "emb_ln_g": jnp.ones((1, HIDDEN), jnp.float32),
        "emb_ln_b": jnp.zeros((1, HIDDEN), jnp.float32),
        "pool_w": nrm(k_pool, (HIDDEN, HIDDEN)).astype(jnp.bfloat16),
        "pool_b": jnp.zeros((1, HIDDEN), jnp.float32),
    }

    # MLP head padded to lane-dense 128-wide slabs (real cols at the front,
    # zero padding behind -> lane-aligned stores, identical math).
    lin1_w = nrm(k_l1, (HIDDEN, L1))          # stands in for (768, l1)
    lin2_w = nrm(k_l2, (L1, NUM_CLASSES))
    w1_pad = jnp.zeros((HIDDEN, LANE), jnp.float32).at[:, :L1].set(lin1_w)
    w2_pad = jnp.zeros((LANE, LANE), jnp.float32).at[:L1, :NUM_CLASSES].set(lin2_w)
    p["lin1_w"] = w1_pad.astype(jnp.bfloat16)
    p["lin1_b"] = jnp.zeros((1, LANE), jnp.float32)
    p["lin2_w"] = w2_pad.astype(jnp.bfloat16)
    p["lin2_b"] = jnp.zeros((1, LANE), jnp.float32)

    wqkv_l, wo_l, wi_l, wo2_l = [], [], [], []
    lk = k_layers
    for _ in range(LAYERS):
        k1, k2, k3, k4, k5, k6, lk = jax.random.split(lk, 7)
        wq = nrm(k1, (HIDDEN, HIDDEN))
        wk = nrm(k2, (HIDDEN, HIDDEN))
        wv = nrm(k3, (HIDDEN, HIDDEN))
        wo = nrm(k4, (HIDDEN, HIDDEN))
        wi = nrm(k5, (HIDDEN, INTERMEDIATE))
        wo2 = nrm(k6, (INTERMEDIATE, HIDDEN))

        # Fused QKV weight, head-dim padded 64->128 so every per-head slice in
        # the kernel is 128-lane aligned.  Padded cols are zero (and the
        # padded bias entries are zero) so the math is unchanged.
        slab = jnp.zeros((HIDDEN, HEADS * 3 * HD_PAD), jnp.float32)
        for h in range(HEADS):
            c0 = h * 3 * HD_PAD
            hq = wq[:, h * HEAD_DIM:(h + 1) * HEAD_DIM]
            hk = wk[:, h * HEAD_DIM:(h + 1) * HEAD_DIM]
            hv = wv[:, h * HEAD_DIM:(h + 1) * HEAD_DIM]
            slab = slab.at[:, c0:c0 + HEAD_DIM].set(hq)
            slab = slab.at[:, c0 + HD_PAD:c0 + HD_PAD + HEAD_DIM].set(hk)
            slab = slab.at[:, c0 + 2 * HD_PAD:c0 + 2 * HD_PAD + HEAD_DIM].set(hv)
        wqkv_l.append(slab)

        # Attention-output weight with zero rows for the padded context cols.
        wo_pad = jnp.zeros((HEADS * HD_PAD, HIDDEN), jnp.float32)
        for h in range(HEADS):
            wo_pad = wo_pad.at[h * HD_PAD:h * HD_PAD + HEAD_DIM, :].set(
                wo[h * HEAD_DIM:(h + 1) * HEAD_DIM, :])
        wo_l.append(wo_pad)

        wi_l.append(wi)
        wo2_l.append(wo2)

    p.update({
        "wqkv": jnp.stack(wqkv_l).astype(jnp.bfloat16),
        "bqkv": jnp.zeros((LAYERS, 1, HEADS * 3 * HD_PAD), jnp.float32),
        "wo": jnp.stack(wo_l).astype(jnp.bfloat16),
        "bo": jnp.zeros((LAYERS, 1, HIDDEN), jnp.float32),
        "ln1_g": jnp.ones((LAYERS, 1, HIDDEN), jnp.float32),
        "ln1_b": jnp.zeros((LAYERS, 1, HIDDEN), jnp.float32),
        "wi": jnp.stack(wi_l).astype(jnp.bfloat16),
        "bi": jnp.zeros((LAYERS, 1, INTERMEDIATE), jnp.float32),
        "wo2": jnp.stack(wo2_l).astype(jnp.bfloat16),
        "bo2": jnp.zeros((LAYERS, 1, HIDDEN), jnp.float32),
        "ln2_g": jnp.ones((LAYERS, 1, HIDDEN), jnp.float32),
        "ln2_b": jnp.zeros((LAYERS, 1, HIDDEN), jnp.float32),
    })
    return p


# ------------------------------ forward pass ---------------------------------
def bert_mlp_forward(params, input_ids, attention_mask, token_type_ids,
                     last=False):
    b, s = input_ids.shape
    h = HIDDEN

    # --- embeddings (data-dependent gather = plain-JAX glue), DMA'd as bf16 ---
    pos_ids = jnp.arange(s)
    emb = (params["word_emb"][input_ids]
           + params["pos_emb"][pos_ids][None, :, :]
           + params["type_emb"][token_type_ids])
    emb = emb.reshape(b * s, h).astype(jnp.bfloat16)
    maskf = attention_mask.astype(jnp.float32)

    inputs = [
        emb, maskf,
        params["emb_ln_g"], params["emb_ln_b"],
        params["wqkv"], params["bqkv"], params["wo"], params["bo"],
        params["ln1_g"], params["ln1_b"],
        params["wi"], params["bi"], params["wo2"], params["bo2"],
        params["ln2_g"], params["ln2_b"],
        params["pool_w"], params["pool_b"],
        params["lin1_w"], params["lin1_b"],
        params["lin2_w"], params["lin2_b"],
    ]
    # True -> per-layer streamed weight (leading LAYERS axis), False -> resident
    layered = [False, False, False, False,
               True, True, True, True, True, True,
               True, True, True, True, True, True,
               False, False, False, False, False, False]
    in_specs = [(_per_layer_spec(x.shape) if f else _resident_spec(x.shape))
                for x, f in zip(inputs, layered)]

    kernel = functools.partial(
        _bert_layer_kernel,
        batch=b, seq=s, heads=HEADS, head_dim=HEAD_DIM, hd_pad=HD_PAD,
        eps=LN_EPS)

    # NOTE(perf): for throughput, batch many more rows per call (>=128 on v5e,
    # >=256 on v6e/v7x) and add a "parallel" row-block grid axis (v7x megacore).
    embed_pad, logits_pad = pl.pallas_call(
        kernel,
        out_shape=(jax.ShapeDtypeStruct((b * s, LANE), jnp.float32),
                   jax.ShapeDtypeStruct((b * s, LANE), jnp.float32)),
        grid=(LAYERS,),
        in_specs=in_specs,
        out_specs=(_resident_spec((b * s, LANE)),
                   _resident_spec((b * s, LANE))),
        scratch_shapes=[pltpu.VMEM((b * s, HIDDEN), jnp.float32),
                        pltpu.VMEM((b * s, HEADS * HD_PAD), jnp.float32)],
        compiler_params=pltpu.CompilerParams(
            dimension_semantics=("arbitrary",)),
    )(*inputs)

    # [CLS] rows + real (un-padded) columns.
    embed = embed_pad.reshape(b, s, LANE)[:, 0, :L1]
    logits = logits_pad.reshape(b, s, LANE)[:, 0, :NUM_CLASSES]

    if last:
        return logits, embed
    return logits


# ---------------------------------- main -------------------------------------
if __name__ == "__main__":
    key = jax.random.PRNGKey(0)
    k_params, k_ids = jax.random.split(key)

    params = init_params(k_params)
    input_ids = jax.random.randint(k_ids, (BATCH, SEQ), 0, VOCAB, jnp.int32)
    attention_mask = jnp.ones((BATCH, SEQ), jnp.int32)
    token_type_ids = jnp.zeros((BATCH, SEQ), jnp.int32)

    fwd = jax.jit(functools.partial(bert_mlp_forward, last=True))
    logits, embed = fwd(params, input_ids, attention_mask, token_type_ids)
    jax.block_until_ready((logits, embed))

    assert logits.shape == (BATCH, NUM_CLASSES)
    assert embed.shape == (BATCH, L1)
    print("KERNEL_OK")
</pallas_src>

<mosaic_0001>
module attributes {stable_mosaic.version = 11 : i64} {
  func.func @_bert_layer_kernel(%arg0: i32, %arg1: memref<16x128xbf16, #tpu.memory_space<vmem>>, %arg2: memref<2x8xf32, #tpu.memory_space<vmem>>, %arg3: memref<1x128xf32, #tpu.memory_space<vmem>>, %arg4: memref<1x128xf32, #tpu.memory_space<vmem>>, %arg5: memref<1x128x768xbf16, #tpu.memory_space<vmem>>, %arg6: memref<1x1x768xf32, #tpu.memory_space<vmem>>, %arg7: memref<1x256x128xbf16, #tpu.memory_space<vmem>>, %arg8: memref<1x1x128xf32, #tpu.memory_space<vmem>>, %arg9: memref<1x1x128xf32, #tpu.memory_space<vmem>>, %arg10: memref<1x1x128xf32, #tpu.memory_space<vmem>>, %arg11: memref<1x128x256xbf16, #tpu.memory_space<vmem>>, %arg12: memref<1x1x256xf32, #tpu.memory_space<vmem>>, %arg13: memref<1x256x128xbf16, #tpu.memory_space<vmem>>, %arg14: memref<1x1x128xf32, #tpu.memory_space<vmem>>, %arg15: memref<1x1x128xf32, #tpu.memory_space<vmem>>, %arg16: memref<1x1x128xf32, #tpu.memory_space<vmem>>, %arg17: memref<128x128xbf16, #tpu.memory_space<vmem>>, %arg18: memref<1x128xf32, #tpu.memory_space<vmem>>, %arg19: memref<128x128xbf16, #tpu.memory_space<vmem>>, %arg20: memref<1x128xf32, #tpu.memory_space<vmem>>, %arg21: memref<128x128xbf16, #tpu.memory_space<vmem>>, %arg22: memref<1x128xf32, #tpu.memory_space<vmem>>, %arg23: memref<16x128xf32, #tpu.memory_space<vmem>>, %arg24: memref<16x128xf32, #tpu.memory_space<vmem>>, %arg25: memref<16x128xf32, #tpu.memory_space<vmem>>, %arg26: memref<16x256xf32, #tpu.memory_space<vmem>>) attributes {dimension_semantics = [#tpu.dimension_semantics<arbitrary>], iteration_bounds = array<i64: 2>, scalar_prefetch = 0 : i64, scratch_operands = 2 : i64, tpu.core_type = #tpu.core_type<tc>, window_params = [{pipeline_mode = #tpu.pipeline_mode<synchronous>, transform_indices = @transform_0, window_bounds = array<i64: 16, 128>}, {pipeline_mode = #tpu.pipeline_mode<synchronous>, transform_indices = @transform_1, window_bounds = array<i64: 2, 8>}, {pipeline_mode = #tpu.pipeline_mode<synchronous>, transform_indices = @transform_2, window_bounds = array<i64: 1, 128>}, {pipeline_mode = #tpu.pipeline_mode<synchronous>, transform_indices = @transform_3, window_bounds = array<i64: 1, 128>}, {transform_indices = @transform_4, window_bounds = array<i64: 1, 128, 768>}, {transform_indices = @transform_5, window_bounds = array<i64: 1, 1, 768>}, {transform_indices = @transform_6, window_bounds = array<i64: 1, 256, 128>}, {transform_indices = @transform_7, window_bounds = array<i64: 1, 1, 128>}, {transform_indices = @transform_8, window_bounds = array<i64: 1, 1, 128>}, {transform_indices = @transform_9, window_bounds = array<i64: 1, 1, 128>}, {transform_indices = @transform_10, window_bounds = array<i64: 1, 128, 256>}, {transform_indices = @transform_11, window_bounds = array<i64: 1, 1, 256>}, {transform_indices = @transform_12, window_bounds = array<i64: 1, 256, 128>}, {transform_indices = @transform_13, window_bounds = array<i64: 1, 1, 128>}, {transform_indices = @transform_14, window_bounds = array<i64: 1, 1, 128>}, {transform_indices = @transform_15, window_bounds = array<i64: 1, 1, 128>}, {pipeline_mode = #tpu.pipeline_mode<synchronous>, transform_indices = @transform_16, window_bounds = array<i64: 128, 128>}, {pipeline_mode = #tpu.pipeline_mode<synchronous>, transform_indices = @transform_17, window_bounds = array<i64: 1, 128>}, {pipeline_mode = #tpu.pipeline_mode<synchronous>, transform_indices = @transform_18, window_bounds = array<i64: 128, 128>}, {pipeline_mode = #tpu.pipeline_mode<synchronous>, transform_indices = @transform_19, window_bounds = array<i64: 1, 128>}, {pipeline_mode = #tpu.pipeline_mode<synchronous>, transform_indices = @transform_20, window_bounds = array<i64: 128, 128>}, {pipeline_mode = #tpu.pipeline_mode<synchronous>, transform_indices = @transform_21, window_bounds = array<i64: 1, 128>}, {pipeline_mode = #tpu.pipeline_mode<synchronous>, transform_indices = @transform_22, window_bounds = array<i64: 16, 128>}, {pipeline_mode = #tpu.pipeline_mode<synchronous>, transform_indices = @transform_23, window_bounds = array<i64: 16, 128>}]} {
    %c0_i32 = arith.constant 0 : i32
    %0 = arith.cmpi eq, %arg0, %c0_i32 : i32
    %1 = arith.extui %0 : i1 to i32
    %c0_i32_0 = arith.constant 0 : i32
    %2 = arith.cmpi ne, %1, %c0_i32_0 : i32
    scf.if %2 {
      %c0_90 = arith.constant 0 : index
      %c0_91 = arith.constant 0 : index
      %191 = vector.load %arg1[%c0_90, %c0_91] : memref<16x128xbf16, #tpu.memory_space<vmem>>, vector<16x128xbf16>
      %192 = arith.extf %191 : vector<16x128xbf16> to vector<16x128xf32>
      %c0_92 = arith.constant 0 : index
      %c0_93 = arith.constant 0 : index
      %193 = vector.load %arg3[%c0_92, %c0_93] : memref<1x128xf32, #tpu.memory_space<vmem>>, vector<1x128xf32>
      %c0_94 = arith.constant 0 : index
      %c0_95 = arith.constant 0 : index
      %194 = vector.load %arg4[%c0_94, %c0_95] : memref<1x128xf32, #tpu.memory_space<vmem>>, vector<1x128xf32>
      %cst_96 = arith.constant dense<0.000000e+00> : vector<16xf32>
      %195 = vector.multi_reduction <add>, %192, %cst_96 [1] : vector<16x128xf32> to vector<16xf32>
      %196 = vector.shape_cast %195 : vector<16xf32> to vector<16x1xf32>
      %cst_97 = arith.constant 1.280000e+02 : f32
      %197 = vector.broadcast %cst_97 : f32 to vector<16x1xf32>
      %198 = arith.divf %196, %197 : vector<16x1xf32>
      %199 = vector.broadcast %198 : vector<16x1xf32> to vector<16x128xf32>
      %200 = arith.subf %192, %199 : vector<16x128xf32>
      %201 = arith.mulf %200, %200 : vector<16x128xf32>
      %cst_98 = arith.constant dense<0.000000e+00> : vector<16xf32>
      %202 = vector.multi_reduction <add>, %201, %cst_98 [1] : vector<16x128xf32> to vector<16xf32>
      %203 = vector.shape_cast %202 : vector<16xf32> to vector<16x1xf32>
      %cst_99 = arith.constant 1.280000e+02 : f32
      %204 = vector.broadcast %cst_99 : f32 to vector<16x1xf32>
      %205 = arith.divf %203, %204 : vector<16x1xf32>
      %cst_100 = arith.constant 9.99999996E-13 : f32
      %206 = vector.broadcast %cst_100 : f32 to vector<16x1xf32>
      %207 = arith.addf %205, %206 : vector<16x1xf32>
      %208 = math.rsqrt %207 : vector<16x1xf32>
      %209 = vector.broadcast %208 : vector<16x1xf32> to vector<16x128xf32>
      %210 = arith.mulf %200, %209 : vector<16x128xf32>
      %211 = vector.broadcast %193 : vector<1x128xf32> to vector<16x128xf32>
      %212 = arith.mulf %210, %211 : vector<16x128xf32>
      %213 = vector.broadcast %194 : vector<1x128xf32> to vector<16x128xf32>
      %214 = arith.addf %212, %213 : vector<16x128xf32>
      %c0_101 = arith.constant 0 : index
      %c0_102 = arith.constant 0 : index
      %215 = vector.load %arg25[%c0_101, %c0_102] : memref<16x128xf32, #tpu.memory_space<vmem>>, vector<16x128xf32>
      tpu.vector_store %arg25[%c0_101, %c0_102], %214 {strides = array<i32>} : memref<16x128xf32, #tpu.memory_space<vmem>>, vector<16x128xf32>,
    } else {
    }
    %c0 = arith.constant 0 : index
    %c0_1 = arith.constant 0 : index
    %3 = vector.load %arg25[%c0, %c0_1] : memref<16x128xf32, #tpu.memory_space<vmem>>, vector<16x128xf32>
    %c0_2 = arith.constant 0 : index
    %c0_3 = arith.constant 0 : index
    %4 = vector.load %arg2[%c0_2, %c0_3] : memref<2x8xf32, #tpu.memory_space<vmem>>, vector<2x8xf32>
    %cst = arith.constant 1.000000e+00 : f32
    %5 = vector.broadcast %cst : f32 to vector<2x8xf32>
    %6 = arith.subf %5, %4 : vector<2x8xf32>
    %cst_4 = arith.constant -1.000000e+04 : f32
    %7 = vector.broadcast %cst_4 : f32 to vector<2x8xf32>
    %8 = arith.mulf %6, %7 : vector<2x8xf32>
    %9 = arith.truncf %3 : vector<16x128xf32> to vector<16x128xbf16>
    %c0_5 = arith.constant 0 : index
    %c0_6 = arith.constant 0 : index
    %c0_7 = arith.constant 0 : index
    %10 = vector.load %arg5[%c0_5, %c0_6, %c0_7] : memref<1x128x768xbf16, #tpu.memory_space<vmem>>, vector<1x128x768xbf16>
    %11 = vector.shape_cast %10 : vector<1x128x768xbf16> to vector<128x768xbf16>
    %cst_8 = arith.constant dense<0.000000e+00> : vector<16x768xf32>
    %12 = tpu.matmul %9, %11, %cst_8 {dimension_numbers = #tpu.dot_dimension_numbers<[1], [0], [0], [1], [0, 0, 1, 1], [], []>} : vector<16x128xbf16>, vector<128x768xbf16>, vector<16x768xf32> -> vector<16x768xf32>
    %c0_9 = arith.constant 0 : index
    %c0_10 = arith.constant 0 : index
    %c0_11 = arith.constant 0 : index
    %13 = vector.load %arg6[%c0_9, %c0_10, %c0_11] : memref<1x1x768xf32, #tpu.memory_space<vmem>>, vector<1x1x768xf32>
    %14 = vector.shape_cast %13 : vector<1x1x768xf32> to vector<1x768xf32>
    %15 = vector.broadcast %14 : vector<1x768xf32> to vector<16x768xf32>
    %16 = arith.addf %12, %15 : vector<16x768xf32>
    %17 = vector.extract_strided_slice %8 {offsets = [0, 0], sizes = [1, 8], strides = [1, 1]} : vector<2x8xf32> to vector<1x8xf32>
    %18 = vector.extract_strided_slice %16 {offsets = [0, 0], sizes = [8, 128], strides = [1, 1]} : vector<16x768xf32> to vector<8x128xf32>
    %19 = vector.extract_strided_slice %16 {offsets = [0, 128], sizes = [8, 128], strides = [1, 1]} : vector<16x768xf32> to vector<8x128xf32>
    %20 = vector.extract_strided_slice %16 {offsets = [0, 256], sizes = [8, 128], strides = [1, 1]} : vector<16x768xf32> to vector<8x128xf32>
    %cst_12 = arith.constant dense<0.000000e+00> : vector<8x8xf32>
    %21 = tpu.matmul %18, %19, %cst_12 {dimension_numbers = #tpu.dot_dimension_numbers<[1], [1], [0], [0], [0, 0, 1, 0], [], []>} : vector<8x128xf32>, vector<8x128xf32>, vector<8x8xf32> -> vector<8x8xf32>
    %cst_13 = arith.constant 1.250000e-01 : f32
    %22 = vector.broadcast %cst_13 : f32 to vector<8x8xf32>
    %23 = arith.mulf %21, %22 : vector<8x8xf32>
    %24 = vector.broadcast %17 : vector<1x8xf32> to vector<8x8xf32>
    %25 = arith.addf %23, %24 : vector<8x8xf32>
    %cst_14 = arith.constant dense<0xFF800000> : vector<8xf32>
    %26 = vector.multi_reduction <maximumf>, %25, %cst_14 [1] : vector<8x8xf32> to vector<8xf32>
    %27 = vector.shape_cast %26 : vector<8xf32> to vector<8x1xf32>
    %28 = vector.broadcast %27 : vector<8x1xf32> to vector<8x8xf32>
    %29 = arith.subf %25, %28 : vector<8x8xf32>
    %30 = math.exp %29 : vector<8x8xf32>
    %cst_15 = arith.constant dense<0.000000e+00> : vector<8xf32>
    %31 = vector.multi_reduction <add>, %30, %cst_15 [1] : vector<8x8xf32> to vector<8xf32>
    %32 = vector.shape_cast %31 : vector<8xf32> to vector<8x1xf32>
    %33 = tpu.reciprocal %32 {approx = true} : vector<8x1xf32> -> vector<8x1xf32>
    %34 = vector.broadcast %33 : vector<8x1xf32> to vector<8x8xf32>
    %35 = arith.mulf %30, %34 : vector<8x8xf32>
    %cst_16 = arith.constant dense<0.000000e+00> : vector<8x128xf32>
    %36 = tpu.matmul %35, %20, %cst_16 {dimension_numbers = #tpu.dot_dimension_numbers<[1], [0], [0], [1], [0, 0, 1, 1], [], []>} : vector<8x8xf32>, vector<8x128xf32>, vector<8x128xf32> -> vector<8x128xf32>
    %c0_17 = arith.constant 0 : index
    %c0_18 = arith.constant 0 : index
    %37 = vector.load %arg26[%c0_17, %c0_18] : memref<16x256xf32, #tpu.memory_space<vmem>>, vector<8x128xf32>
    tpu.vector_store %arg26[%c0_17, %c0_18], %36 {strides = array<i32>} : memref<16x256xf32, #tpu.memory_space<vmem>>, vector<8x128xf32>,
    %38 = vector.extract_strided_slice %16 {offsets = [0, 384], sizes = [8, 128], strides = [1, 1]} : vector<16x768xf32> to vector<8x128xf32>
    %39 = vector.extract_strided_slice %16 {offsets = [0, 512], sizes = [8, 128], strides = [1, 1]} : vector<16x768xf32> to vector<8x128xf32>
    %40 = vector.extract_strided_slice %16 {offsets = [0, 640], sizes = [8, 128], strides = [1, 1]} : vector<16x768xf32> to vector<8x128xf32>
    %cst_19 = arith.constant dense<0.000000e+00> : vector<8x8xf32>
    %41 = tpu.matmul %38, %39, %cst_19 {dimension_numbers = #tpu.dot_dimension_numbers<[1], [1], [0], [0], [0, 0, 1, 0], [], []>} : vector<8x128xf32>, vector<8x128xf32>, vector<8x8xf32> -> vector<8x8xf32>
    %cst_20 = arith.constant 1.250000e-01 : f32
    %42 = vector.broadcast %cst_20 : f32 to vector<8x8xf32>
    %43 = arith.mulf %41, %42 : vector<8x8xf32>
    %44 = vector.broadcast %17 : vector<1x8xf32> to vector<8x8xf32>
    %45 = arith.addf %43, %44 : vector<8x8xf32>
    %cst_21 = arith.constant dense<0xFF800000> : vector<8xf32>
    %46 = vector.multi_reduction <maximumf>, %45, %cst_21 [1] : vector<8x8xf32> to vector<8xf32>
    %47 = vector.shape_cast %46 : vector<8xf32> to vector<8x1xf32>
    %48 = vector.broadcast %47 : vector<8x1xf32> to vector<8x8xf32>
    %49 = arith.subf %45, %48 : vector<8x8xf32>
    %50 = math.exp %49 : vector<8x8xf32>
    %cst_22 = arith.constant dense<0.000000e+00> : vector<8xf32>
    %51 = vector.multi_reduction <add>, %50, %cst_22 [1] : vector<8x8xf32> to vector<8xf32>
    %52 = vector.shape_cast %51 : vector<8xf32> to vector<8x1xf32>
    %53 = tpu.reciprocal %52 {approx = true} : vector<8x1xf32> -> vector<8x1xf32>
    %54 = vector.broadcast %53 : vector<8x1xf32> to vector<8x8xf32>
    %55 = arith.mulf %50, %54 : vector<8x8xf32>
    %cst_23 = arith.constant dense<0.000000e+00> : vector<8x128xf32>
    %56 = tpu.matmul %55, %40, %cst_23 {dimension_numbers = #tpu.dot_dimension_numbers<[1], [0], [0], [1], [0, 0, 1, 1], [], []>} : vector<8x8xf32>, vector<8x128xf32>, vector<8x128xf32> -> vector<8x128xf32>
    %c0_24 = arith.constant 0 : index
    %c128 = arith.constant 128 : index
    %57 = vector.load %arg26[%c0_24, %c128] : memref<16x256xf32, #tpu.memory_space<vmem>>, vector<8x128xf32>
    tpu.vector_store %arg26[%c0_24, %c128], %56 {strides = array<i32>} : memref<16x256xf32, #tpu.memory_space<vmem>>, vector<8x128xf32>,
    %58 = vector.extract_strided_slice %8 {offsets = [1, 0], sizes = [1, 8], strides = [1, 1]} : vector<2x8xf32> to vector<1x8xf32>
    %59 = vector.extract_strided_slice %16 {offsets = [8, 0], sizes = [8, 128], strides = [1, 1]} : vector<16x768xf32> to vector<8x128xf32>
    %60 = vector.extract_strided_slice %16 {offsets = [8, 128], sizes = [8, 128], strides = [1, 1]} : vector<16x768xf32> to vector<8x128xf32>
    %61 = vector.extract_strided_slice %16 {offsets = [8, 256], sizes = [8, 128], strides = [1, 1]} : vector<16x768xf32> to vector<8x128xf32>
    %cst_25 = arith.constant dense<0.000000e+00> : vector<8x8xf32>
    %62 = tpu.matmul %59, %60, %cst_25 {dimension_numbers = #tpu.dot_dimension_numbers<[1], [1], [0], [0], [0, 0, 1, 0], [], []>} : vector<8x128xf32>, vector<8x128xf32>, vector<8x8xf32> -> vector<8x8xf32>
    %cst_26 = arith.constant 1.250000e-01 : f32
    %63 = vector.broadcast %cst_26 : f32 to vector<8x8xf32>
    %64 = arith.mulf %62, %63 : vector<8x8xf32>
    %65 = vector.broadcast %58 : vector<1x8xf32> to vector<8x8xf32>
    %66 = arith.addf %64, %65 : vector<8x8xf32>
    %cst_27 = arith.constant dense<0xFF800000> : vector<8xf32>
    %67 = vector.multi_reduction <maximumf>, %66, %cst_27 [1] : vector<8x8xf32> to vector<8xf32>
    %68 = vector.shape_cast %67 : vector<8xf32> to vector<8x1xf32>
    %69 = vector.broadcast %68 : vector<8x1xf32> to vector<8x8xf32>
    %70 = arith.subf %66, %69 : vector<8x8xf32>
    %71 = math.exp %70 : vector<8x8xf32>
    %cst_28 = arith.constant dense<0.000000e+00> : vector<8xf32>
    %72 = vector.multi_reduction <add>, %71, %cst_28 [1] : vector<8x8xf32> to vector<8xf32>
    %73 = vector.shape_cast %72 : vector<8xf32> to vector<8x1xf32>
    %74 = tpu.reciprocal %73 {approx = true} : vector<8x1xf32> -> vector<8x1xf32>
    %75 = vector.broadcast %74 : vector<8x1xf32> to vector<8x8xf32>
    %76 = arith.mulf %71, %75 : vector<8x8xf32>
    %cst_29 = arith.constant dense<0.000000e+00> : vector<8x128xf32>
    %77 = tpu.matmul %76, %61, %cst_29 {dimension_numbers = #tpu.dot_dimension_numbers<[1], [0], [0], [1], [0, 0, 1, 1], [], []>} : vector<8x8xf32>, vector<8x128xf32>, vector<8x128xf32> -> vector<8x128xf32>
    %c8 = arith.constant 8 : index
    %c0_30 = arith.constant 0 : index
    %78 = vector.load %arg26[%c8, %c0_30] : memref<16x256xf32, #tpu.memory_space<vmem>>, vector<8x128xf32>
    tpu.vector_store %arg26[%c8, %c0_30], %77 {strides = array<i32>} : memref<16x256xf32, #tpu.memory_space<vmem>>, vector<8x128xf32>,
    %79 = vector.extract_strided_slice %16 {offsets = [8, 384], sizes = [8, 128], strides = [1, 1]} : vector<16x768xf32> to vector<8x128xf32>
    %80 = vector.extract_strided_slice %16 {offsets = [8, 512], sizes = [8, 128], strides = [1, 1]} : vector<16x768xf32> to vector<8x128xf32>
    %81 = vector.extract_strided_slice %16 {offsets = [8, 640], sizes = [8, 128], strides = [1, 1]} : vector<16x768xf32> to vector<8x128xf32>
    %cst_31 = arith.constant dense<0.000000e+00> : vector<8x8xf32>
    %82 = tpu.matmul %79, %80, %cst_31 {dimension_numbers = #tpu.dot_dimension_numbers<[1], [1], [0], [0], [0, 0, 1, 0], [], []>} : vector<8x128xf32>, vector<8x128xf32>, vector<8x8xf32> -> vector<8x8xf32>
    %cst_32 = arith.constant 1.250000e-01 : f32
    %83 = vector.broadcast %cst_32 : f32 to vector<8x8xf32>
    %84 = arith.mulf %82, %83 : vector<8x8xf32>
    %85 = vector.broadcast %58 : vector<1x8xf32> to vector<8x8xf32>
    %86 = arith.addf %84, %85 : vector<8x8xf32>
    %cst_33 = arith.constant dense<0xFF800000> : vector<8xf32>
    %87 = vector.multi_reduction <maximumf>, %86, %cst_33 [1] : vector<8x8xf32> to vector<8xf32>
    %88 = vector.shape_cast %87 : vector<8xf32> to vector<8x1xf32>
    %89 = vector.broadcast %88 : vector<8x1xf32> to vector<8x8xf32>
    %90 = arith.subf %86, %89 : vector<8x8xf32>
    %91 = math.exp %90 : vector<8x8xf32>
    %cst_34 = arith.constant dense<0.000000e+00> : vector<8xf32>
    %92 = vector.multi_reduction <add>, %91, %cst_34 [1] : vector<8x8xf32> to vector<8xf32>
    %93 = vector.shape_cast %92 : vector<8xf32> to vector<8x1xf32>
    %94 = tpu.reciprocal %93 {approx = true} : vector<8x1xf32> -> vector<8x1xf32>
    %95 = vector.broadcast %94 : vector<8x1xf32> to vector<8x8xf32>
    %96 = arith.mulf %91, %95 : vector<8x8xf32>
    %cst_35 = arith.constant dense<0.000000e+00> : vector<8x128xf32>
    %97 = tpu.matmul %96, %81, %cst_35 {dimension_numbers = #tpu.dot_dimension_numbers<[1], [0], [0], [1], [0, 0, 1, 1], [], []>} : vector<8x8xf32>, vector<8x128xf32>, vector<8x128xf32> -> vector<8x128xf32>
    %c8_36 = arith.constant 8 : index
    %c128_37 = arith.constant 128 : index
    %98 = vector.load %arg26[%c8_36, %c128_37] : memref<16x256xf32, #tpu.memory_space<vmem>>, vector<8x128xf32>
    tpu.vector_store %arg26[%c8_36, %c128_37], %97 {strides = array<i32>} : memref<16x256xf32, #tpu.memory_space<vmem>>, vector<8x128xf32>,
    %c0_38 = arith.constant 0 : index
    %c0_39 = arith.constant 0 : index
    %99 = vector.load %arg26[%c0_38, %c0_39] : memref<16x256xf32, #tpu.memory_space<vmem>>, vector<16x256xf32>
    %100 = arith.truncf %99 : vector<16x256xf32> to vector<16x256xbf16>
    %c0_40 = arith.constant 0 : index
    %c0_41 = arith.constant 0 : index
    %c0_42 = arith.constant 0 : index
    %101 = vector.load %arg7[%c0_40, %c0_41, %c0_42] : memref<1x256x128xbf16, #tpu.memory_space<vmem>>, vector<1x256x128xbf16>
    %102 = vector.shape_cast %101 : vector<1x256x128xbf16> to vector<256x128xbf16>
    %cst_43 = arith.constant dense<0.000000e+00> : vector<16x128xf32>
    %103 = tpu.matmul %100, %102, %cst_43 {dimension_numbers = #tpu.dot_dimension_numbers<[1], [0], [0], [1], [0, 0, 1, 1], [], []>} : vector<16x256xbf16>, vector<256x128xbf16>, vector<16x128xf32> -> vector<16x128xf32>
    %c0_44 = arith.constant 0 : index
    %c0_45 = arith.constant 0 : index
    %c0_46 = arith.constant 0 : index
    %104 = vector.load %arg8[%c0_44, %c0_45, %c0_46] : memref<1x1x128xf32, #tpu.memory_space<vmem>>, vector<1x1x128xf32>
    %105 = vector.shape_cast %104 : vector<1x1x128xf32> to vector<1x128xf32>
    %106 = vector.broadcast %105 : vector<1x128xf32> to vector<16x128xf32>
    %107 = arith.addf %103, %106 : vector<16x128xf32>
    %108 = arith.addf %107, %3 : vector<16x128xf32>
    %c0_47 = arith.constant 0 : index
    %c0_48 = arith.constant 0 : index
    %c0_49 = arith.constant 0 : index
    %109 = vector.load %arg9[%c0_47, %c0_48, %c0_49] : memref<1x1x128xf32, #tpu.memory_space<vmem>>, vector<1x1x128xf32>
    %110 = vector.shape_cast %109 : vector<1x1x128xf32> to vector<1x128xf32>
    %c0_50 = arith.constant 0 : index
    %c0_51 = arith.constant 0 : index
    %c0_52 = arith.constant 0 : index
    %111 = vector.load %arg10[%c0_50, %c0_51, %c0_52] : memref<1x1x128xf32, #tpu.memory_space<vmem>>, vector<1x1x128xf32>
    %112 = vector.shape_cast %111 : vector<1x1x128xf32> to vector<1x128xf32>
    %cst_53 = arith.constant dense<0.000000e+00> : vector<16xf32>
    %113 = vector.multi_reduction <add>, %108, %cst_53 [1] : vector<16x128xf32> to vector<16xf32>
    %114 = vector.shape_cast %113 : vector<16xf32> to vector<16x1xf32>
    %cst_54 = arith.constant 1.280000e+02 : f32
    %115 = vector.broadcast %cst_54 : f32 to vector<16x1xf32>
    %116 = arith.divf %114, %115 : vector<16x1xf32>
    %117 = vector.broadcast %116 : vector<16x1xf32> to vector<16x128xf32>
    %118 = arith.subf %108, %117 : vector<16x128xf32>
    %119 = arith.mulf %118, %118 : vector<16x128xf32>
    %cst_55 = arith.constant dense<0.000000e+00> : vector<16xf32>
    %120 = vector.multi_reduction <add>, %119, %cst_55 [1] : vector<16x128xf32> to vector<16xf32>
    %121 = vector.shape_cast %120 : vector<16xf32> to vector<16x1xf32>
    %cst_56 = arith.constant 1.280000e+02 : f32
    %122 = vector.broadcast %cst_56 : f32 to vector<16x1xf32>
    %123 = arith.divf %121, %122 : vector<16x1xf32>
    %cst_57 = arith.constant 9.99999996E-13 : f32
    %124 = vector.broadcast %cst_57 : f32 to vector<16x1xf32>
    %125 = arith.addf %123, %124 : vector<16x1xf32>
    %126 = math.rsqrt %125 : vector<16x1xf32>
    %127 = vector.broadcast %126 : vector<16x1xf32> to vector<16x128xf32>
    %128 = arith.mulf %118, %127 : vector<16x128xf32>
    %129 = vector.broadcast %110 : vector<1x128xf32> to vector<16x128xf32>
    %130 = arith.mulf %128, %129 : vector<16x128xf32>
    %131 = vector.broadcast %112 : vector<1x128xf32> to vector<16x128xf32>
    %132 = arith.addf %130, %131 : vector<16x128xf32>
    %133 = arith.truncf %132 : vector<16x128xf32> to vector<16x128xbf16>
    %c0_58 = arith.constant 0 : index
    %c0_59 = arith.constant 0 : index
    %c0_60 = arith.constant 0 : index
    %134 = vector.load %arg11[%c0_58, %c0_59, %c0_60] : memref<1x128x256xbf16, #tpu.memory_space<vmem>>, vector<1x128x256xbf16>
    %135 = vector.shape_cast %134 : vector<1x128x256xbf16> to vector<128x256xbf16>
    %cst_61 = arith.constant dense<0.000000e+00> : vector<16x256xf32>
    %136 = tpu.matmul %133, %135, %cst_61 {dimension_numbers = #tpu.dot_dimension_numbers<[1], [0], [0], [1], [0, 0, 1, 1], [], []>} : vector<16x128xbf16>, vector<128x256xbf16>, vector<16x256xf32> -> vector<16x256xf32>
    %c0_62 = arith.constant 0 : index
    %c0_63 = arith.constant 0 : index
    %c0_64 = arith.constant 0 : index
    %137 = vector.load %arg12[%c0_62, %c0_63, %c0_64] : memref<1x1x256xf32, #tpu.memory_space<vmem>>, vector<1x1x256xf32>
    %138 = vector.shape_cast %137 : vector<1x1x256xf32> to vector<1x256xf32>
    %139 = vector.broadcast %138 : vector<1x256xf32> to vector<16x256xf32>
    %140 = arith.addf %136, %139 : vector<16x256xf32>
    %cst_65 = arith.constant 5.000000e-01 : f32
    %141 = vector.broadcast %cst_65 : f32 to vector<16x256xf32>
    %142 = arith.mulf %141, %140 : vector<16x256xf32>
    %cst_66 = arith.constant 4.471500e-02 : f32
    %143 = vector.broadcast %cst_66 : f32 to vector<16x256xf32>
    %144 = arith.mulf %143, %140 : vector<16x256xf32>
    %145 = arith.mulf %144, %140 : vector<16x256xf32>
    %146 = arith.mulf %145, %140 : vector<16x256xf32>
    %147 = arith.addf %140, %146 : vector<16x256xf32>
    %cst_67 = arith.constant 0.797884583 : f32
    %148 = vector.broadcast %cst_67 : f32 to vector<16x256xf32>
    %149 = arith.mulf %148, %147 : vector<16x256xf32>
    %150 = math.tanh %149 : vector<16x256xf32>
    %cst_68 = arith.constant 1.000000e+00 : f32
    %151 = vector.broadcast %cst_68 : f32 to vector<16x256xf32>
    %152 = arith.addf %151, %150 : vector<16x256xf32>
    %153 = arith.mulf %142, %152 : vector<16x256xf32>
    %154 = arith.truncf %153 : vector<16x256xf32> to vector<16x256xbf16>
    %c0_69 = arith.constant 0 : index
    %c0_70 = arith.constant 0 : index
    %c0_71 = arith.constant 0 : index
    %155 = vector.load %arg13[%c0_69, %c0_70, %c0_71] : memref<1x256x128xbf16, #tpu.memory_space<vmem>>, vector<1x256x128xbf16>
    %156 = vector.shape_cast %155 : vector<1x256x128xbf16> to vector<256x128xbf16>
    %cst_72 = arith.constant dense<0.000000e+00> : vector<16x128xf32>
    %157 = tpu.matmul %154, %156, %cst_72 {dimension_numbers = #tpu.dot_dimension_numbers<[1], [0], [0], [1], [0, 0, 1, 1], [], []>} : vector<16x256xbf16>, vector<256x128xbf16>, vector<16x128xf32> -> vector<16x128xf32>
    %c0_73 = arith.constant 0 : index
    %c0_74 = arith.constant 0 : index
    %c0_75 = arith.constant 0 : index
    %158 = vector.load %arg14[%c0_73, %c0_74, %c0_75] : memref<1x1x128xf32, #tpu.memory_space<vmem>>, vector<1x1x128xf32>
    %159 = vector.shape_cast %158 : vector<1x1x128xf32> to vector<1x128xf32>
    %160 = vector.broadcast %159 : vector<1x128xf32> to vector<16x128xf32>
    %161 = arith.addf %157, %160 : vector<16x128xf32>
    %162 = arith.addf %161, %132 : vector<16x128xf32>
    %c0_76 = arith.constant 0 : index
    %c0_77 = arith.constant 0 : index
    %c0_78 = arith.constant 0 : index
    %163 = vector.load %arg15[%c0_76, %c0_77, %c0_78] : memref<1x1x128xf32, #tpu.memory_space<vmem>>, vector<1x1x128xf32>
    %164 = vector.shape_cast %163 : vector<1x1x128xf32> to vector<1x128xf32>
    %c0_79 = arith.constant 0 : index
    %c0_80 = arith.constant 0 : index
    %c0_81 = arith.constant 0 : index
    %165 = vector.load %arg16[%c0_79, %c0_80, %c0_81] : memref<1x1x128xf32, #tpu.memory_space<vmem>>, vector<1x1x128xf32>
    %166 = vector.shape_cast %165 : vector<1x1x128xf32> to vector<1x128xf32>
    %cst_82 = arith.constant dense<0.000000e+00> : vector<16xf32>
    %167 = vector.multi_reduction <add>, %162, %cst_82 [1] : vector<16x128xf32> to vector<16xf32>
    %168 = vector.shape_cast %167 : vector<16xf32> to vector<16x1xf32>
    %cst_83 = arith.constant 1.280000e+02 : f32
    %169 = vector.broadcast %cst_83 : f32 to vector<16x1xf32>
    %170 = arith.divf %168, %169 : vector<16x1xf32>
    %171 = vector.broadcast %170 : vector<16x1xf32> to vector<16x128xf32>
    %172 = arith.subf %162, %171 : vector<16x128xf32>
    %173 = arith.mulf %172, %172 : vector<16x128xf32>
    %cst_84 = arith.constant dense<0.000000e+00> : vector<16xf32>
    %174 = vector.multi_reduction <add>, %173, %cst_84 [1] : vector<16x128xf32> to vector<16xf32>
    %175 = vector.shape_cast %174 : vector<16xf32> to vector<16x1xf32>
    %cst_85 = arith.constant 1.280000e+02 : f32
    %176 = vector.broadcast %cst_85 : f32 to vector<16x1xf32>
    %177 = arith.divf %175, %176 : vector<16x1xf32>
    %cst_86 = arith.constant 9.99999996E-13 : f32
    %178 = vector.broadcast %cst_86 : f32 to vector<16x1xf32>
    %179 = arith.addf %177, %178 : vector<16x1xf32>
    %180 = math.rsqrt %179 : vector<16x1xf32>
    %181 = vector.broadcast %180 : vector<16x1xf32> to vector<16x128xf32>
    %182 = arith.mulf %172, %181 : vector<16x128xf32>
    %183 = vector.broadcast %164 : vector<1x128xf32> to vector<16x128xf32>
    %184 = arith.mulf %182, %183 : vector<16x128xf32>
    %185 = vector.broadcast %166 : vector<1x128xf32> to vector<16x128xf32>
    %186 = arith.addf %184, %185 : vector<16x128xf32>
    %c0_87 = arith.constant 0 : index
    %c0_88 = arith.constant 0 : index
    %187 = vector.load %arg25[%c0_87, %c0_88] : memref<16x128xf32, #tpu.memory_space<vmem>>, vector<16x128xf32>
    tpu.vector_store %arg25[%c0_87, %c0_88], %186 {strides = array<i32>} : memref<16x128xf32, #tpu.memory_space<vmem>>, vector<16x128xf32>,
    %c1_i32 = arith.constant 1 : i32
    %188 = arith.cmpi eq, %arg0, %c1_i32 : i32
    %189 = arith.extui %188 : i1 to i32
    %c0_i32_89 = arith.constant 0 : i32
    %190 = arith.cmpi ne, %189, %c0_i32_89 : i32
    scf.if %190 {
      %191 = arith.truncf %186 : vector<16x128xf32> to vector<16x128xbf16>
      %c0_90 = arith.constant 0 : index
      %c0_91 = arith.constant 0 : index
      %192 = vector.load %arg17[%c0_90, %c0_91] : memref<128x128xbf16, #tpu.memory_space<vmem>>, vector<128x128xbf16>
      %cst_92 = arith.constant dense<0.000000e+00> : vector<16x128xf32>
      %193 = tpu.matmul %191, %192, %cst_92 {dimension_numbers = #tpu.dot_dimension_numbers<[1], [0], [0], [1], [0, 0, 1, 1], [], []>} : vector<16x128xbf16>, vector<128x128xbf16>, vector<16x128xf32> -> vector<16x128xf32>
      %c0_93 = arith.constant 0 : index
      %c0_94 = arith.constant 0 : index
      %194 = vector.load %arg18[%c0_93, %c0_94] : memref<1x128xf32, #tpu.memory_space<vmem>>, vector<1x128xf32>
      %195 = vector.broadcast %194 : vector<1x128xf32> to vector<16x128xf32>
      %196 = arith.addf %193, %195 : vector<16x128xf32>
      %197 = math.tanh %196 : vector<16x128xf32>
      %198 = arith.truncf %197 : vector<16x128xf32> to vector<16x128xbf16>
      %c0_95 = arith.constant 0 : index
      %c0_96 = arith.constant 0 : index
      %199 = vector.load %arg19[%c0_95, %c0_96] : memref<128x128xbf16, #tpu.memory_space<vmem>>, vector<128x128xbf16>
      %cst_97 = arith.constant dense<0.000000e+00> : vector<16x128xf32>
      %200 = tpu.matmul %198, %199, %cst_97 {dimension_numbers = #tpu.dot_dimension_numbers<[1], [0], [0], [1], [0, 0, 1, 1], [], []>} : vector<16x128xbf16>, vector<128x128xbf16>, vector<16x128xf32> -> vector<16x128xf32>
      %c0_98 = arith.constant 0 : index
      %c0_99 = arith.constant 0 : index
      %201 = vector.load %arg20[%c0_98, %c0_99] : memref<1x128xf32, #tpu.memory_space<vmem>>, vector<1x128xf32>
      %202 = vector.broadcast %201 : vector<1x128xf32> to vector<16x128xf32>
      %203 = arith.addf %200, %202 : vector<16x128xf32>
      %204 = arith.truncf %203 : vector<16x128xf32> to vector<16x128xbf16>
      %c0_100 = arith.constant 0 : index
      %c0_101 = arith.constant 0 : index
      %205 = vector.load %arg21[%c0_100, %c0_101] : memref<128x128xbf16, #tpu.memory_space<vmem>>, vector<128x128xbf16>
      %cst_102 = arith.constant dense<0.000000e+00> : vector<16x128xf32>
      %206 = tpu.matmul %204, %205, %cst_102 {dimension_numbers = #tpu.dot_dimension_numbers<[1], [0], [0], [1], [0, 0, 1, 1], [], []>} : vector<16x128xbf16>, vector<128x128xbf16>, vector<16x128xf32> -> vector<16x128xf32>
      %c0_103 = arith.constant 0 : index
      %c0_104 = arith.constant 0 : index
      %207 = vector.load %arg22[%c0_103, %c0_104] : memref<1x128xf32, #tpu.memory_space<vmem>>, vector<1x128xf32>
      %208 = vector.broadcast %207 : vector<1x128xf32> to vector<16x128xf32>
      %209 = arith.addf %206, %208 : vector<16x128xf32>
      %c0_105 = arith.constant 0 : index
      %c0_106 = arith.constant 0 : index
      %210 = vector.load %arg23[%c0_105, %c0_106] : memref<16x128xf32, #tpu.memory_space<vmem>>, vector<16x128xf32>
      tpu.vector_store %arg23[%c0_105, %c0_106], %203 {strides = array<i32>} : memref<16x128xf32, #tpu.memory_space<vmem>>, vector<16x128xf32>,
      %c0_107 = arith.constant 0 : index
      %c0_108 = arith.constant 0 : index
      %211 = vector.load %arg24[%c0_107, %c0_108] : memref<16x128xf32, #tpu.memory_space<vmem>>, vector<16x128xf32>
      tpu.vector_store %arg24[%c0_107, %c0_108], %209 {strides = array<i32>} : memref<16x128xf32, #tpu.memory_space<vmem>>, vector<16x128xf32>,
    } else {
    }
    return
  }
  func.func @transform_0(%arg0: i32) -> (i32, i32) {
    %c0_i32 = arith.constant 0 : i32
    %c0_i32_0 = arith.constant 0 : i32
    %c0_i32_1 = arith.constant 0 : i32
    return %c0_i32, %c0_i32_0 : i32, i32
  }
  func.func @transform_1(%arg0: i32) -> (i32, i32) {
    %c0_i32 = arith.constant 0 : i32
    %c0_i32_0 = arith.constant 0 : i32
    %c0_i32_1 = arith.constant 0 : i32
    return %c0_i32, %c0_i32_0 : i32, i32
  }
  func.func @transform_2(%arg0: i32) -> (i32, i32) {
    %c0_i32 = arith.constant 0 : i32
    %c0_i32_0 = arith.constant 0 : i32
    %c0_i32_1 = arith.constant 0 : i32
    return %c0_i32, %c0_i32_0 : i32, i32
  }
  func.func @transform_3(%arg0: i32) -> (i32, i32) {
    %c0_i32 = arith.constant 0 : i32
    %c0_i32_0 = arith.constant 0 : i32
    %c0_i32_1 = arith.constant 0 : i32
    return %c0_i32, %c0_i32_0 : i32, i32
  }
  func.func @transform_4(%arg0: i32) -> (i32, i32, i32) {
    %c0_i32 = arith.constant 0 : i32
    %c0_i32_0 = arith.constant 0 : i32
    %c0_i32_1 = arith.constant 0 : i32
    return %arg0, %c0_i32, %c0_i32_0 : i32, i32, i32
  }
  func.func @transform_5(%arg0: i32) -> (i32, i32, i32) {
    %c0_i32 = arith.constant 0 : i32
    %c0_i32_0 = arith.constant 0 : i32
    %c0_i32_1 = arith.constant 0 : i32
    return %arg0, %c0_i32, %c0_i32_0 : i32, i32, i32
  }
  func.func @transform_6(%arg0: i32) -> (i32, i32, i32) {
    %c0_i32 = arith.constant 0 : i32
    %c0_i32_0 = arith.constant 0 : i32
    %c0_i32_1 = arith.constant 0 : i32
    return %arg0, %c0_i32, %c0_i32_0 : i32, i32, i32
  }
  func.func @transform_7(%arg0: i32) -> (i32, i32, i32) {
    %c0_i32 = arith.constant 0 : i32
    %c0_i32_0 = arith.constant 0 : i32
    %c0_i32_1 = arith.constant 0 : i32
    return %arg0, %c0_i32, %c0_i32_0 : i32, i32, i32
  }
  func.func @transform_8(%arg0: i32) -> (i32, i32, i32) {
    %c0_i32 = arith.constant 0 : i32
    %c0_i32_0 = arith.constant 0 : i32
    %c0_i32_1 = arith.constant 0 : i32
    return %arg0, %c0_i32, %c0_i32_0 : i32, i32, i32
  }
  func.func @transform_9(%arg0: i32) -> (i32, i32, i32) {
    %c0_i32 = arith.constant 0 : i32
    %c0_i32_0 = arith.constant 0 : i32
    %c0_i32_1 = arith.constant 0 : i32
    return %arg0, %c0_i32, %c0_i32_0 : i32, i32, i32
  }
  func.func @transform_10(%arg0: i32) -> (i32, i32, i32) {
    %c0_i32 = arith.constant 0 : i32
    %c0_i32_0 = arith.constant 0 : i32
    %c0_i32_1 = arith.constant 0 : i32
    return %arg0, %c0_i32, %c0_i32_0 : i32, i32, i32
  }
  func.func @transform_11(%arg0: i32) -> (i32, i32, i32) {
    %c0_i32 = arith.constant 0 : i32
    %c0_i32_0 = arith.constant 0 : i32
    %c0_i32_1 = arith.constant 0 : i32
    return %arg0, %c0_i32, %c0_i32_0 : i32, i32, i32
  }
  func.func @transform_12(%arg0: i32) -> (i32, i32, i32) {
    %c0_i32 = arith.constant 0 : i32
    %c0_i32_0 = arith.constant 0 : i32
    %c0_i32_1 = arith.constant 0 : i32
    return %arg0, %c0_i32, %c0_i32_0 : i32, i32, i32
  }
  func.func @transform_13(%arg0: i32) -> (i32, i32, i32) {
    %c0_i32 = arith.constant 0 : i32
    %c0_i32_0 = arith.constant 0 : i32
    %c0_i32_1 = arith.constant 0 : i32
    return %arg0, %c0_i32, %c0_i32_0 : i32, i32, i32
  }
  func.func @transform_14(%arg0: i32) -> (i32, i32, i32) {
    %c0_i32 = arith.constant 0 : i32
    %c0_i32_0 = arith.constant 0 : i32
    %c0_i32_1 = arith.constant 0 : i32
    return %arg0, %c0_i32, %c0_i32_0 : i32, i32, i32
  }
  func.func @transform_15(%arg0: i32) -> (i32, i32, i32) {
    %c0_i32 = arith.constant 0 : i32
    %c0_i32_0 = arith.constant 0 : i32
    %c0_i32_1 = arith.constant 0 : i32
    return %arg0, %c0_i32, %c0_i32_0 : i32, i32, i32
  }
  func.func @transform_16(%arg0: i32) -> (i32, i32) {
    %c0_i32 = arith.constant 0 : i32
    %c0_i32_0 = arith.constant 0 : i32
    %c0_i32_1 = arith.constant 0 : i32
    return %c0_i32, %c0_i32_0 : i32, i32
  }
  func.func @transform_17(%arg0: i32) -> (i32, i32) {
    %c0_i32 = arith.constant 0 : i32
    %c0_i32_0 = arith.constant 0 : i32
    %c0_i32_1 = arith.constant 0 : i32
    return %c0_i32, %c0_i32_0 : i32, i32
  }
  func.func @transform_18(%arg0: i32) -> (i32, i32) {
    %c0_i32 = arith.constant 0 : i32
    %c0_i32_0 = arith.constant 0 : i32
    %c0_i32_1 = arith.constant 0 : i32
    return %c0_i32, %c0_i32_0 : i32, i32
  }
  func.func @transform_19(%arg0: i32) -> (i32, i32) {
    %c0_i32 = arith.constant 0 : i32
    %c0_i32_0 = arith.constant 0 : i32
    %c0_i32_1 = arith.constant 0 : i32
    return %c0_i32, %c0_i32_0 : i32, i32
  }
  func.func @transform_20(%arg0: i32) -> (i32, i32) {
    %c0_i32 = arith.constant 0 : i32
    %c0_i32_0 = arith.constant 0 : i32
    %c0_i32_1 = arith.constant 0 : i32
    return %c0_i32, %c0_i32_0 : i32, i32
  }
  func.func @transform_21(%arg0: i32) -> (i32, i32) {
    %c0_i32 = arith.constant 0 : i32
    %c0_i32_0 = arith.constant 0 : i32
    %c0_i32_1 = arith.constant 0 : i32
    return %c0_i32, %c0_i32_0 : i32, i32
  }
  func.func @transform_22(%arg0: i32) -> (i32, i32) {
    %c0_i32 = arith.constant 0 : i32
    %c0_i32_0 = arith.constant 0 : i32
    %c0_i32_1 = arith.constant 0 : i32
    return %c0_i32, %c0_i32_0 : i32, i32
  }
  func.func @transform_23(%arg0: i32) -> (i32, i32) {
    %c0_i32 = arith.constant 0 : i32
    %c0_i32_0 = arith.constant 0 : i32
    %c0_i32_1 = arith.constant 0 : i32
    return %c0_i32, %c0_i32_0 : i32, i32
  }
}

</mosaic_0001>

<bundles_post_ra>
// kernel: bert_mlp_forward.1
= control target key start
LH: loop header
LB: loop body
LE: loop exit
PB: predicated region body
PF: predicated region fallthrough
CT: control target
= control target key end

     0   :  { %s4340_s0 = inlined_call_operand.vmem [shape: bf16[16,128], index: 0, kind: input, shape index: {}]   ;;  %s4341_s1 = inlined_call_operand.vmem [shape: f32[2,8], index: 1, kind: input, shape index: {}]   ;;  %s4342_s2 = inlined_call_operand.vmem [shape: f32[1,128], index: 2, kind: input, shape index: {}]   ;;  %s4343_s3 = inlined_call_operand.vmem [shape: f32[1,128], index: 3, kind: input, shape index: {}]   ;;  %s4344_s4 = inlined_call_operand.hbm [shape: bf16[2,128,768], index: 4, kind: input, shape index: {}]   ;;  %s4345_s5 = inlined_call_operand.vmem [shape: f32[2,1,768], index: 5, kind: input, shape index: {}]   ;;  %s4346_s6 = inlined_call_operand.hbm [shape: bf16[2,256,128], index: 6, kind: input, shape index: {}]   ;;  %s4347_s7 = inlined_call_operand.vmem [shape: f32[2,1,128], index: 7, kind: input, shape index: {}]   ;;  %s4348_s8 = inlined_call_operand.vmem [shape: f32[2,1,128], index: 8, kind: input, shape index: {}]   ;;  %s4349_s9 = inlined_call_operand.vmem [shape: f32[2,1,128], index: 9, kind: input, shape index: {}]   ;;  %s4350_s10 = inlined_call_operand.hbm [shape: bf16[2,128,256], index: 10, kind: input, shape index: {}]   ;;  %s4351_s11 = inlined_call_operand.vmem [shape: f32[2,1,256], index: 11, kind: input, shape index: {}]   ;;  %s4352_s12 = inlined_call_operand.hbm [shape: bf16[2,256,128], index: 12, kind: input, shape index: {}]   ;;  %s4353_s13 = inlined_call_operand.vmem [shape: f32[2,1,128], index: 13, kind: input, shape index: {}]   ;;  %s4354_s14 = inlined_call_operand.vmem [shape: f32[2,1,128], index: 14, kind: input, shape index: {}]   ;;  %s4355_s15 = inlined_call_operand.vmem [shape: f32[2,1,128], index: 15, kind: input, shape index: {}]   ;;  %s4356_s16 = inlined_call_operand.vmem [shape: bf16[128,128], index: 16, kind: input, shape index: {}]   ;;  %s4357_s17 = inlined_call_operand.vmem [shape: f32[1,128], index: 17, kind: input, shape index: {}]   ;;  %s4358_s18 = inlined_call_operand.vmem [shape: bf16[128,128], index: 18, kind: input, shape index: {}]   ;;  %s4359_s19 = inlined_call_operand.vmem [shape: f32[1,128], index: 19, kind: input, shape index: {}]   ;;  %s4360_s20 = inlined_call_operand.vmem [shape: bf16[128,128], index: 20, kind: input, shape index: {}]   ;;  %s4361_s21 = inlined_call_operand.vmem [shape: f32[1,128], index: 21, kind: input, shape index: {}]   ;;  %s4362_s22 = inlined_call_operand.vmem [shape: f32[16,128], index: 22, kind: output, shape index: {0}]   ;;  %s4363_s23 = inlined_call_operand.vmem [shape: f32[16,128], index: 23, kind: output, shape index: {1}]  }
   0x1   :  { %4378 = sst [smem:[#allocation17_spill]] %s4340_s0 }
   0x2   :  { %4379 = sst [smem:[#allocation18_spill]] %s4341_s1 }
   0x3   :  { %4380 = sst [smem:[#allocation19_spill]] %s4342_s2 }
   0x4   :  { %4381 = sst [smem:[#allocation20_spill]] %s4343_s3 }
   0x5   :  { %4382 = sst [smem:[#allocation21_spill]] %s4344_s4 }
   0x6   :  { %4383 = sst [smem:[#allocation22_spill]] %s4345_s5 }
   0x7   :  { %4384 = sst [smem:[#allocation23_spill]] %s4346_s6 }
   0x8   :  { %4385 = sst [smem:[#allocation24_spill]] %s4347_s7 }
   0x9   :  { %4386 = sst [smem:[#allocation25_spill]] %s4350_s10 }
   0xa   :  { %4387 = sst [smem:[#allocation26_spill]] %s4354_s14 }
   0xb   :  { %4388 = sst [smem:[#allocation27_spill]] %s4355_s15 }
   0xc   :  { %4389 = sst [smem:[#allocation28_spill]] %s4356_s16 }
   0xd   :  { %4390 = sst [smem:[#allocation29_spill]] %s4357_s17 }
   0xe   :  { %4391 = sst [smem:[#allocation30_spill]] %s4358_s18 }
   0xf   :  { %4392 = sst [smem:[#allocation31_spill]] %s4359_s19 }
  0x10   :  { %4393 = sst [smem:[#allocation32_spill]] %s4360_s20 }
  0x11   :  { %4394 = sst [smem:[#allocation33_spill]] %s4361_s21 }
  0x12   :  { %4395 = sst [smem:[#allocation34_spill]] %s4362_s22 }
  0x13   :  { %4396 = sst [smem:[#allocation35_spill]] %s4363_s23 }
  0x14   :  { %29 = vsyncpa [#allocation5], 0 }
  0x15   :  { %31 = vsyncpa [#allocation5 + $0x1], 0 }
  0x16   :  { %32 = vsyncpa [#allocation7], 0 }
  0x17   :  { %34 = vsyncpa [#allocation7 + $0x1], 0 }
  0x18   :  { %35 = vsyncpa [#allocation10], 0 }
  0x19   :  { %37 = vsyncpa [#allocation10 + $0x1], 0  ;;  %s3755_s4 = smov 0   ;;  %s3757_s30 = smov 0  }
  0x1a   :  { %s3759_s24 = smov 0   ;;  %s3761_s25 = smov 0  }
  0x1b LB: > { %4397 = sst [smem:[#allocation14_spill]] %s3621_s24  ;;  %s3774_s5 = sadd.s32 4294967295, %s3625_s25   ;;  %s3625_s25 = sphi %s3761_s25, %s4432_s25   ;;  %s3621_s24 = sphi %s3759_s24, %s4434_s24   ;;  %s3617_s30 = sphi %s3757_s30, %s4436_s30   ;;  %s3613_s4 = sphi %s3755_s4, %s4435_s4  }
  0x1c   : > { %s3777_s1 = sadd.s32 1, %s3625_s25   ;;  %s134_s2 = sadd.s32 1, %s3621_s24 }
  0x1d   : > { %4398 = sst [smem:[#allocation15_spill]] %s3777_s1  ;;  %s131_s26 = ssub.s32 %s3625_s25, %s3777_s1 }
  0x1e   : > { %p132_p0 = scmp.eq.s32.totalorder %s131_s26, 0  ;;  %p141_p1 = scmp.ne.s32.totalorder %s3621_s24, %s3617_s30 }
  0x1f   : > { %p142_p2 = scmp.eq.s32.totalorder %s3625_s25, 0  ;;  %p147_p3 = scmp.ne.s32.totalorder %s3617_s30, %s3613_s4 }
  0x20   : > { %s3787_s6 = scalar_select %p132_p0, %s3621_s24, %s134_s2  }
  0x21   : > { %p143_p4 = por %p142_p2, %p141_p1  ;;  %p148_p5 = scmp.eq.s32.totalorder %s3774_s5, 0 }
  0x22   : > { %4399 = sst [smem:[#allocation16_spill]] %s3787_s6  ;;  %p3367_p6 = scmp.lt.s32.totalorder %s3625_s25, 2 }
  0x23   : > { %p3791_p7 = por %p148_p5, %p147_p3  ;;  %s3796_s7 = sand.u32 1, %s3621_s24  }
  0x24   : > { %p3798_p8 = pnand %p3367_p6, %p143_p4  ;;  %s684_s29 = sand.u32 1, %s3625_s25  }
  0x25   : > { %s3804_s3 = sshll.u32 %s3796_s7, 7  ;;  %s3807_s0 = sshll.u32 %s3625_s25, 7 }
  0x26   : > { %s688_s4 = scalar_lea.vmem [#allocation6], %s3804_s3  ;;  %s4402_s24 = sld [smem:[#allocation23_spill]] }
  0x27   : > { %s696_s26 = sshll.u32 %s688_s4, 4  ;;  %s3814_s22 = scalar_lea.sflag [#allocation7], %s684_s29  ;;  %s697_s26 = int_to_ptr.vmem [resolvable:$true] %s696_s26 }
  0x28   : > { %p3467_p10 = pneg %p3798_p8 }
  0x2c   : > { %s4403_s1 = smov %s4402_s24  ;;  %s693_s23 = scalar_lea.hbm %s4402_s24, %s3807_s0 }
  0x2d   : > { %s694_s21 = sshll.u32 %s693_s23, 4  ;;  %s3470_s6 = scalar_lea.hbm %s4403_s1, 256  ;;  %s695_s21 = int_to_ptr.hbm [resolvable:$true] %s694_s21 }
  0x2e   : > { %s3463_s19 = sshra.s32 %s695_s21, 4  ;;  %s3464_s19 = int_to_ptr.hbm [resolvable:$true] %s3463_s19 }
  0x2f   : > { %s3465_s17 = scalar_lea.hbm %s3464_s19, 128  ;;  %p3471_p13 = scmp.lt.s32.totalorder %s3464_s19, %s4403_s1 }
  0x30   : > { %p3466_p9 = scmp.ne.s32.totalorder %s3464_s19, %s3465_s17  ;;  %p3472_p0 = scmp.lt.s32.totalorder %s3470_s6, %s3465_s17 }
  0x32   : > { %p3468_p11 = pnand %p3467_p10, %p3466_p9  ;;  %p3473_p1 = por %p3472_p0, %p3471_p13 }
  0x34   : > { %p3469_p12 = pneg %p3468_p11 }
  0x36   : > { %p3474_p2 = pnand %p3473_p1, %p3469_p12 }
  0x38   : > { %3477 = shalt.err (!%p3474_p2)
}
  0x39   : > { %s4375_s23 = smov 64   ;;  %s4376_s29 = smov 4  }
  0x3a   : > { %3360 = dma.hbm_to_vmem [thread:$0]  (!%p3798_p8), %s695_s21, 2048, %s697_s26, %s3814_s22, %s4375_s23, %s4375_s23, %s4376_s29  }
  0x3b   : > { %p2722_p3 = scmp.ge.s32.totalorder %s3625_s25, 1  ;;  %p791_p4 = scmp.lt.s32.totalorder %s3625_s25, 3 }
  0x3c   : > { %s3342_s17 = smul.u32 384, %s3796_s7  ;;  %s4405_s24 = sld [smem:[#allocation21_spill]] }
  0x3d   : > { %p3836_p5 = pnand %p2722_p3, %p791_p4  ;;  %s3343_s20 = smul.u32 384, %s3625_s25 }
  0x3e   : > { %s659_s18 = scalar_lea.vmem [#allocation4], %s3342_s17  ;;  %s656_s14 = scalar_lea.sflag [#allocation5], %s3796_s7 }
  0x3f   : > { %s667_s16 = sshll.u32 %s659_s18, 4  ;;  %s668_s16 = int_to_ptr.vmem [resolvable:$true] %s667_s16 }
  0x42   : > { %s4406_s2 = smov %s4405_s24  ;;  %s664_s1 = scalar_lea.hbm %s4405_s24, %s3343_s20 }
  0x43   : > { %s665_s15 = sshll.u32 %s664_s1, 4  ;;  %s3500_s29 = scalar_lea.hbm %s4406_s2, 768  ;;  %s666_s15 = int_to_ptr.hbm [resolvable:$true] %s665_s15 }
  0x44   : > { %s3493_s21 = sshra.s32 %s666_s15, 4  ;;  %s3494_s21 = int_to_ptr.hbm [resolvable:$true] %s3493_s21 }
  0x45   : > { %s3495_s26 = scalar_lea.hbm %s3494_s21, 384  ;;  %p3501_p12 = scmp.lt.s32.totalorder %s3494_s21, %s4406_s2 }
  0x46   : > { %p3496_p6 = scmp.ne.s32.totalorder %s3494_s21, %s3495_s26  ;;  %p3502_p13 = scmp.lt.s32.totalorder %s3500_s29, %s3495_s26 }
  0x48   : > { %p3498_p9 = pnand %p3496_p6, %p3467_p10  ;;  %p3503_p0 = por %p3502_p13, %p3501_p12 }
  0x4a   : > { %p3499_p11 = pneg %p3498_p9 }
  0x4c   : > { %p3504_p1 = pnand %p3503_p0, %p3499_p11 }
  0x4e   : > { %3507 = shalt.err (!%p3504_p1)
}
  0x4f   : > { %s3629_s18 = smov 384   ;;  %s3630_s1 = smov 24  }
  0x50   : > { %3357 = dma.hbm_to_vmem [thread:$0]  (!%p3798_p8), %s666_s15, 6144, %s668_s16, %s656_s14, %s3629_s18, %s3629_s18, %s3630_s1  }
  0x51   : > { %s4407_s10 = sld [smem:[#allocation25_spill]]  ;;  %s728_s25 = scalar_lea.vmem [#allocation8], %s3804_s3 }
  0x52   : > { %s736_s4 = sshll.u32 %s728_s25, 4  ;;  %s737_s4 = int_to_ptr.vmem [resolvable:$true] %s736_s4 }
  0x57   : > { %s733_s23 = scalar_lea.hbm %s4407_s10, %s3807_s0  ;;  %s3530_s14 = scalar_lea.hbm %s4407_s10, 256 }
  0x58   : > { %s734_s24 = sshll.u32 %s733_s23, 4  ;;  %s735_s24 = int_to_ptr.hbm [resolvable:$true] %s734_s24 }
  0x59   : > { %s3523_s29 = sshra.s32 %s735_s24, 4  ;;  %s3524_s29 = int_to_ptr.hbm [resolvable:$true] %s3523_s29 }
  0x5a   : > { %s3525_s21 = scalar_lea.hbm %s3524_s29, 128  ;;  %p3531_p6 = scmp.lt.s32.totalorder %s3524_s29, %s4407_s10 }
  0x5b   : > { %p3526_p2 = scmp.ne.s32.totalorder %s3524_s29, %s3525_s21  ;;  %p3532_p9 = scmp.lt.s32.totalorder %s3530_s14, %s3525_s21 }
  0x5d   : > { %p3528_p3 = pnand %p3526_p2, %p3467_p10  ;;  %p3533_p11 = por %p3532_p9, %p3531_p6 }
  0x5f   : > { %p3529_p4 = pneg %p3528_p3 }
  0x61   : > { %p3534_p12 = pnand %p3533_p11, %p3529_p4 }
  0x63   : > { %3537 = shalt.err (!%p3534_p12)
}
  0x64   : > { %s3631_s18 = smov 128   ;;  %s3632_s1 = smov 8  }
  0x65   : > { %3363 = dma.hbm_to_vmem [thread:$0]  (!%p3798_p8), %s735_s24, 2048, %s737_s4, %s3814_s22, %s3631_s18, %s3631_s18, %s3632_s1  }
  0x66   : > { %s762_s23 = scalar_lea.hbm %s4352_s12, %s3807_s0  ;;  %s757_s25 = scalar_lea.vmem [#allocation9], %s3804_s3 }
  0x67   : > { %s765_s29 = sshll.u32 %s757_s25, 4  ;;  %s763_s21 = sshll.u32 %s762_s23, 4  ;;  %s766_s29 = int_to_ptr.vmem [resolvable:$true] %s765_s29  ;;  %s764_s21 = int_to_ptr.hbm [resolvable:$true] %s763_s21 }
  0x68   : > { %s754_s26 = scalar_lea.sflag [#allocation10], %s3796_s7  ;;  %s3553_s20 = sshra.s32 %s764_s21, 4  ;;  %s3554_s20 = int_to_ptr.hbm [resolvable:$true] %s3553_s20 }
  0x69   : > { %s3555_s14 = scalar_lea.hbm %s3554_s20, 128  ;;  %s3560_s24 = scalar_lea.hbm %s4352_s12, 256 }
  0x6a   : > { %p3556_p13 = scmp.ne.s32.totalorder %s3554_s20, %s3555_s14  ;;  %p3561_p2 = scmp.lt.s32.totalorder %s3554_s20, %s4352_s12 }
  0x6b   : > { %p3562_p3 = scmp.lt.s32.totalorder %s3560_s24, %s3555_s14 }
  0x6c   : > { %p3558_p0 = pnand %p3556_p13, %p3467_p10 }
  0x6d   : > { %p3563_p4 = por %p3562_p3, %p3561_p2 }
  0x6e   : > { %p3559_p1 = pneg %p3558_p0 }
  0x70   : > { %p3564_p6 = pnand %p3563_p4, %p3559_p1 }
  0x72   : > { %3567 = shalt.err (!%p3564_p6)
}
  0x73   : > { %s4408_s7 = smov 4   ;;  %s4409_s3 = smov 64  }
  0x74   : > { %3366 = dma.hbm_to_vmem [thread:$0]  (!%p3798_p8), %s764_s21, 2048, %s766_s29, %s754_s26, %s4409_s3, %s4409_s3, %s4408_s7  }
  0x75   : > { %795 = sbr.rel (%p3836_p5) target bundleno = 2593 (0xa21), region = 108  ;;  %s797_s16 = sand.u32 (!%p3836_p5), 1, %s3617_s30  }
  0x76   : > { %s3344_s18 = smul.u32 (!%p3836_p5), 384, %s797_s16  ;;  %s798_s1 = scalar_lea.sflag (!%p3836_p5), [#allocation5], %s797_s16 }
  0x78   : > { %s3896_s17 = scalar_lea.vmem (!%p3836_p5), [#allocation4], %s3344_s18 }
  0x7a   : > { %3600 = dma.done.wait (%p3791_p7), %s798_s1, 6144  }
  0x7b   : > { %3602 = vsyncadd (%p3791_p7), %s798_s1, 4294961152  ;;  %s807_s28 = sand.u32 1, %s3774_s5   ;;  %s2723_s6 = sshll.u32 %s797_s16, 7 }
  0x7c   : > { %s808_s23 = scalar_lea.sflag [#allocation7], %s807_s28  ;;  %s3903_s25 = scalar_lea.vmem [#allocation6], %s2723_s6 }
  0x7d   : > { %3604 = dma.done.wait (%p3791_p7), %s808_s23, 4096  }
  0x7e   : > { %3606 = vsyncadd (%p3791_p7), %s808_s23, 4294963200  ;;  %s3909_s19 = scalar_lea.vmem [#allocation8], %s2723_s6  ;;  %s828_s29 = scalar_lea.sflag [#allocation10], %s797_s16 }
  0x7f   : > { %s3911_s21 = scalar_lea.vmem [#allocation9], %s2723_s6 }
  0x80   : > { %3608 = dma.done.wait (%p3791_p7), %s828_s29, 2048  }
  0x81   : > { %3610 = vsyncadd (%p3791_p7), %s828_s29, 4294965248  ;;  %p931_p8 = scmp.lt.s32.totalorder %s3774_s5, 1  ;;  %s4411_s28 = sld [smem:[#allocation22_spill]] }
  0x82   : > { %s4412_s0 = sld [smem:[#allocation26_spill]]  ;;  %p2727_p7 = scmp.ne.s32.totalorder %s3774_s5, 0 }
  0x83   : > { %s3919_s26 = scalar_select %p931_p8, %s3774_s5, 1 }
  0x84   : > { %s4413_s24 = sld [smem:[#allocation27_spill]] }
  0x85   : > { %s3345_s20 = smul.u32 6, %s3919_s26  ;;  %s2726_s23 = sshll.u32 %s3919_s26, 1 }
  0x86   : > { %s3943_s10 = scalar_lea.vmem %s4351_s11, %s2726_s23  ;;  %s950_s22 = scalar_lea.vmem %s4353_s13, %s3919_s26 }
  0x87   : > { %s3937_s6 = scalar_lea.vmem %s4411_s28, %s3345_s20  ;;  %960 = sbr.rel (%p2727_p7) target bundleno = 420 (0x1a4), region = 128 }
  0x88   : > { %s953_s7 = scalar_lea.vmem %s4412_s0, %s3919_s26  ;;  %s4414_s2 = sld [smem:[#allocation17_spill]] (!%p2727_p7) }
  0x89   : > { %s4415_s16 = sld [smem:[#allocation19_spill]] (!%p2727_p7) }
  0x8a   : > { %s956_s18 = scalar_lea.vmem %s4413_s24, %s3919_s26  ;;  %s4416_s29 = sld [smem:[#allocation20_spill]] (!%p2727_p7) }
  0x8c   : > { %v3633_v3 = vmov 128.0  }
  0x8d   : > { %3410 = vrcp.f32 %v3633_v3 }
  0x8e   : > { %v3339_v0 = vld [vmem:[%s4414_s2] sm:$0xff]  }
  0x8f   : > { %v3340_v1 = vunpack.c.l.bf16 %v3339_v0  ;;  %v3341_v2 = vunpack.c.h.bf16 %v3339_v0  ;;  %v3408_v32 = vld [vmem:[%s4415_s16] ss:$0 sm:$0xff] }
  0x90   : > { %v3409_v35 = vld [vmem:[%s4416_s29] ss:$0 sm:$0xff] }
  0x91   : > { %967 = vadd.xlane.f32.xlu0 %v3340_v1 }
  0x93   : > { %v3411_v4 = vpop.eup %3410 }
  0x94   : > { %v972_v5 = vmul.f32 128.0, %v3411_v4  ;;  %vm976_vm0 = vweird.f32 %v3411_v4 }
  0x96   : > { %v973_v6 = vsub.f32 1.0, %v972_v5 }
  0x98   : > { %v974_v7 = vmul.f32 %v3411_v4, %v973_v6 }
  0x99   : > { %969 = vadd.xlane.f32.xlu0 %v3341_v2 }
  0x9a   : > { %v975_v8 = vadd.f32 %v3411_v4, %v974_v7 }
  0x9c   : > { %v977_v9 = vsel %vm976_vm0, %v3411_v4, %v975_v8 }
 0x104   : > { %v968_v10 = vpop.xlane.xlu0 %967 }
 0x105   : > { %v978_v11 = vmul.f32 %v977_v9, %v968_v10 }
 0x107   : > { %v980_v12 = vsub.f32 %v3340_v1, %v978_v11 }
 0x109   : > { %v982_v13 = vmul.f32 %v980_v12, %v980_v12 }
 0x10b   : > { %984 = vadd.xlane.f32.xlu1 %v982_v13 }
 0x10c   : > { %v970_v14 = vpop.xlane.xlu0 %969 }
 0x10d   : > { %v979_v15 = vmul.f32 %v977_v9, %v970_v14 }
 0x10f   : > { %v981_v16 = vsub.f32 %v3341_v2, %v979_v15 }
 0x111   : > { %v983_v17 = vmul.f32 %v981_v16, %v981_v16 }
 0x113   : > { %986 = vadd.xlane.f32.xlu1 %v983_v17 }
 0x17e   : > { %v985_v18 = vpop.xlane.xlu1 %984 }
 0x17f   : > { %v988_v19 = vmul.f32 %v985_v18, %v977_v9 }
 0x181   : > { %v990_v20 = vadd.f32 1e-12, %v988_v19 }
 0x183   : > { %3412 = vrsqrt.f32 %v990_v20  ;;  %vm998_vm2 = vweird.f32 %v990_v20 }
 0x186   : > { %v987_v21 = vpop.xlane.xlu1 %986 }
 0x187   : > { %v989_v22 = vmul.f32 %v987_v21, %v977_v9 }
 0x189   : > { %v3413_v23 = vpop.eup %3412  ;;  %v991_v24 = vadd.f32 1e-12, %v989_v22 }
 0x18a   : > { %v993_v25 = vmul.f32 %v3413_v23, %v990_v20  ;;  %vm999_vm1 = vweird.f32 %v3413_v23 }
 0x18b   : > { %3414 = vrsqrt.f32 %v991_v24  ;;  %vm1000_vm3 = vmor %vm998_vm2, %vm999_vm1  ;;  %vm1008_vm5 = vweird.f32 %v991_v24 }
 0x18c   : > { %v994_v26 = vmul.f32 %v3413_v23, %v993_v25 }
 0x18e   : > { %v995_v27 = vmul.f32 0.5, %v994_v26 }
 0x190   : > { %v996_v28 = vsub.f32 1.5, %v995_v27 }
 0x191   : > { %v3415_v29 = vpop.eup %3414 }
 0x192   : > { %v997_v30 = vmul.f32 %v3413_v23, %v996_v28  ;;  %v1003_v31 = vmul.f32 %v3415_v29, %v991_v24  ;;  %vm1009_vm4 = vweird.f32 %v3415_v29 }
 0x193   : > { %vm1010_vm6 = vmor %vm1008_vm5, %vm1009_vm4 }
 0x194   : > { %v1001_v33 = vsel %vm1000_vm3, %v3413_v23, %v997_v30  ;;  %v1004_v34 = vmul.f32 %v3415_v29, %v1003_v31 }
 0x195   : > { %v1012_v36 = vmul.f32 %v1001_v33, %v980_v12 }
 0x196   : > { %v1005_v37 = vmul.f32 0.5, %v1004_v34 }
 0x197   : > { %v1017_v38 = vmul.f32 %v3408_v32, %v1012_v36 }
 0x198   : > { %v1006_v39 = vsub.f32 1.5, %v1005_v37 }
 0x199   : > { %v1022_v40 = vadd.f32 %v3409_v35, %v1017_v38 }
 0x19a   : > { %v1007_v41 = vmul.f32 %v3415_v29, %v1006_v39 }
 0x19b   : > { %1024 = vst [vmem:[#allocation2] sm:$0xff] %v1022_v40 }
 0x19c   : > { %v1011_v42 = vsel %vm1010_vm6, %v3415_v29, %v1007_v41 }
 0x19d   : > { %v1013_v43 = vmul.f32 %v1011_v42, %v981_v16 }
 0x19f   : > { %v1018_v44 = vmul.f32 %v3408_v32, %v1013_v43 }
 0x1a1   : > { %v1023_v45 = vadd.f32 %v3409_v35, %v1018_v44 }
 0x1a3   : > { %1025 = vst [vmem:[#allocation2 + $0x8] sm:$0xff] %v1023_v45 }
 0x1a4 PF: > { %v2898_v46 = vld [vmem:[%s3896_s17 + $0x150] sm:$0xf]  ;;  %v3263_v47 = vld [vmem:[%s3896_s17 + $0x164] sm:$0xf0]  ;;  %v3260_v48 = vld [vmem:[%s3896_s17 + $0x154] sm:$0xf]  ;;  %s4420_s20 = scalar_lea.vmem %s4348_s8, %s3919_s26  ;;  %s4421_s24 = scalar_lea.vmem %s4349_s9, %s3919_s26 }
 0x1a5   : > { %v2899_v49 = vor.u32 %v3263_v47, %v2898_v46  ;;  %v2900_v50 = vld [vmem:[%s3896_s17 + $0x168] sm:$0xf0]  ;;  %v2874_v51 = vld [vmem:[%s3896_s17 + $0x120] sm:$0xf]  ;;  %v3257_v52 = vld [vmem:[%s3896_s17 + $0x134] sm:$0xf0] }
 0x1a6   : > { %v2903_v53 = vor.u32 %v3260_v48, %v2900_v50  ;;  %v3254_v54 = vld [vmem:[%s3896_s17 + $0x124] sm:$0xf]  ;;  %v2876_v55 = vld [vmem:[%s3896_s17 + $0x138] sm:$0xf0]  ;;  %v2875_v56 = vor.u32 %v3257_v52, %v2874_v51  ;;  %v2850_v58 = vld [vmem:[%s3896_s17 + $0xf0] sm:$0xf] }
 0x1a7   : > { %1334 = vmatpush.bf16.msra.mxu0 %v2899_v49  ;;  %v2879_v57 = vor.u32 %v3254_v54, %v2876_v55  ;;  %v3251_v59 = vld [vmem:[%s3896_s17 + $0x104] sm:$0xf0]  ;;  %v3248_v60 = vld [vmem:[%s3896_s17 + $0xf4] sm:$0xf]  ;;  %v2852_v61 = vld [vmem:[%s3896_s17 + $0x108] sm:$0xf0] }
 0x1a8   : > { %1348 = vmatpush.bf16.msra.mxu1 %v2903_v53  ;;  %v2851_v62 = vor.u32 %v3251_v59, %v2850_v58  ;;  %v2826_v63 = vld [vmem:[%s3896_s17 + $0xc0] sm:$0xf]  ;;  %v2855_v0 = vor.u32 %v3248_v60, %v2852_v61  ;;  %v3245_v1 = vld [vmem:[%s3896_s17 + $0xd4] sm:$0xf0]  ;;  %v3261_v2 = vld [vmem:[%s3896_s17 + $0x15c] sm:$0xf] }
 0x1a9   : > { %v2908_v3 = vld [vmem:[%s3896_s17 + $0x170] sm:$0xf0]  ;;  %v3242_v4 = vld [vmem:[%s3896_s17 + $0xc4] sm:$0xf]  ;;  %v2828_v5 = vld [vmem:[%s3896_s17 + $0xd8] sm:$0xf0]  ;;  %v2827_v9 = vor.u32 %v3245_v1, %v2826_v63 }
 0x1aa   : > { %v2911_v6 = vor.u32 %v3261_v2, %v2908_v3  ;;  %v3255_v7 = vld [vmem:[%s3896_s17 + $0x12c] sm:$0xf]  ;;  %v2884_v8 = vld [vmem:[%s3896_s17 + $0x140] sm:$0xf0]  ;;  %v2831_v11 = vor.u32 %v3242_v4, %v2828_v5  ;;  %v2802_v12 = vld [vmem:[%s3896_s17 + $0x90] sm:$0xf] }
 0x1ab   : > { %1335 = vmatpush.bf16.msra.mxu0 %v2875_v56  ;;  %v2887_v10 = vor.u32 %v3255_v7, %v2884_v8  ;;  %v3239_v13 = vld [vmem:[%s3896_s17 + $0xa4] sm:$0xf0]  ;;  %v3236_v14 = vld [vmem:[%s3896_s17 + $0x94] sm:$0xf]  ;;  %v2804_v15 = vld [vmem:[%s3896_s17 + $0xa8] sm:$0xf0] }
 0x1ac   : > { %1349 = vmatpush.bf16.msra.mxu1 %v2879_v57  ;;  %1376 = vmatpush.bf16.msra.mxu3 %v2911_v6  ;;  %v3249_v16 = vld [vmem:[%s3896_s17 + $0xfc] sm:$0xf]  ;;  %v2860_v17 = vld [vmem:[%s3896_s17 + $0x110] sm:$0xf0]  ;;  %v2803_v18 = vor.u32 %v3239_v13, %v2802_v12  ;;  %v2778_v19 = vld [vmem:[%s3896_s17 + $0x60] sm:$0xf]  ;;  %v2807_v21 = vor.u32 %v3236_v14, %v2804_v15 }
 0x1ad   : > { %v2863_v20 = vor.u32 %v3249_v16, %v2860_v17  ;;  %v3233_v22 = vld [vmem:[%s3896_s17 + $0x74] sm:$0xf0]  ;;  %v3243_v23 = vld [vmem:[%s3896_s17 + $0xcc] sm:$0xf]  ;;  %v2836_v24 = vld [vmem:[%s3896_s17 + $0xe0] sm:$0xf0] }
 0x1ae   : > { %v3230_v25 = vld [vmem:[%s3896_s17 + $0x64] sm:$0xf]  ;;  %v2780_v26 = vld [vmem:[%s3896_s17 + $0x78] sm:$0xf0]  ;;  %v2779_v27 = vor.u32 %v3233_v22, %v2778_v19  ;;  %v2754_v28 = vld [vmem:[%s3896_s17 + $0x30] sm:$0xf]  ;;  %v2839_v30 = vor.u32 %v3243_v23, %v2836_v24 }
 0x1af   : > { %1336 = vmatpush.bf16.msra.mxu0 %v2851_v62  ;;  %v3227_v29 = vld [vmem:[%s3896_s17 + $0x44] sm:$0xf0]  ;;  %v2783_v31 = vor.u32 %v3230_v25, %v2780_v26  ;;  %v3224_v32 = vld [vmem:[%s3896_s17 + $0x34] sm:$0xf]  ;;  %v3237_v33 = vld [vmem:[%s3896_s17 + $0x9c] sm:$0xf] }
 0x1b0   : > { %1350 = vmatpush.bf16.msra.mxu1 %v2855_v0  ;;  %1377 = vmatpush.bf16.msra.mxu3 %v2887_v10  ;;  %v2812_v34 = vld [vmem:[%s3896_s17 + $0xb0] sm:$0xf0]  ;;  %v2756_v35 = vld [vmem:[%s3896_s17 + $0x48] sm:$0xf0]  ;;  %v2755_v36 = vor.u32 %v3227_v29, %v2754_v28  ;;  %v2730_v37 = vld [vmem:[%s3896_s17] sm:$0xf] }
 0x1b1   : > { %v3221_v38 = vld [vmem:[%s3896_s17 + $0x14] sm:$0xf0]  ;;  %v2815_v39 = vor.u32 %v3237_v33, %v2812_v34  ;;  %v2759_v40 = vor.u32 %v3224_v32, %v2756_v35  ;;  %v3218_v41 = vld [vmem:[%s3896_s17 + $0x4] sm:$0xf]  ;;  %v3231_v42 = vld [vmem:[%s3896_s17 + $0x6c] sm:$0xf] }
 0x1b2   : > { %v2788_v43 = vld [vmem:[%s3896_s17 + $0x80] sm:$0xf0]  ;;  %v2732_v44 = vld [vmem:[%s3896_s17 + $0x18] sm:$0xf0]  ;;  %v2914_v45 = vld [vmem:[%s3896_s17 + $0x160] sm:$0xf]  ;;  %v2731_v47 = vor.u32 %v3221_v38, %v2730_v37 }
 0x1b3   : > { %1337 = vmatpush.bf16.msra.mxu0 %v2827_v9  ;;  %v3265_v46 = vld [vmem:[%s3896_s17 + $0x174] sm:$0xf0]  ;;  %v4013_v48 = vld [vmem:[#allocation2] sm:$0xff]  ;;  %v2791_v49 = vor.u32 %v3231_v42, %v2788_v43  ;;  %v2735_v50 = vor.u32 %v3218_v41, %v2732_v44  ;;  %v3225_v53 = vld [vmem:[%s3896_s17 + $0x3c] sm:$0xf]  ;;  %s4417_s15 = sld [smem:[#allocation18_spill]] }
 0x1b4   : > { %1351 = vmatpush.bf16.msra.mxu1 %v2831_v11  ;;  %1378 = vmatpush.bf16.msra.mxu3 %v2863_v20  ;;  %v2915_v51 = vor.u32 %v3265_v46, %v2914_v45  ;;  %v4015_v52 = vld [vmem:[#allocation2 + $0x8] sm:$0xff]  ;;  %v2764_v54 = vld [vmem:[%s3896_s17 + $0x50] sm:$0xf0]  ;;  %v2890_v55 = vld [vmem:[%s3896_s17 + $0x130] sm:$0xf]  ;;  %vm1441_vm7 = vcmask 64512  }
 0x1b5   : > { %v3259_v56 = vld [vmem:[%s3896_s17 + $0x144] sm:$0xf0]  ;;  %v4023_v57 = vpack.c.bf16 %v4015_v52, %v4013_v48  ;;  %v2767_v58 = vor.u32 %v3225_v53, %v2764_v54  ;;  %v2906_v59 = vld [vmem:[%s3896_s17 + $0x158] sm:$0xf]  ;;  %v3264_v60 = vld [vmem:[%s3896_s17 + $0x16c] sm:$0xf0] }
 0x1b6   : > { %v2882_v61 = vld [vmem:[%s3896_s17 + $0x128] sm:$0xf]  ;;  %v2891_v62 = vor.u32 %v3259_v56, %v2890_v55  ;;  %v3219_v63 = vld [vmem:[%s3896_s17 + $0xc] sm:$0xf]  ;;  %v2740_v0 = vld [vmem:[%s3896_s17 + $0x20] sm:$0xf0]  ;;  %v2907_v1 = vor.u32 %v3264_v60, %v2906_v59 }
 0x1b7   : > { %1338 = vmatpush.bf16.msra.mxu0 %v2803_v18  ;;  %v3258_v2 = vld [vmem:[%s3896_s17 + $0x13c] sm:$0xf0]  ;;  %v3253_v4 = vld [vmem:[%s3896_s17 + $0x114] sm:$0xf0]  ;;  %v2743_v6 = vor.u32 %v3219_v63, %v2740_v0  ;;  %v3252_v8 = vld [vmem:[%s3896_s17 + $0x10c] sm:$0xf0] }
 0x1b8   : > { %1352 = vmatpush.bf16.msra.mxu1 %v2807_v21  ;;  %1379 = vmatpush.bf16.msra.mxu3 %v2839_v30  ;;  %v2866_v3 = vld [vmem:[%s3896_s17 + $0x100] sm:$0xf]  ;;  %v2883_v5 = vor.u32 %v3258_v2, %v2882_v61  ;;  %v2858_v7 = vld [vmem:[%s3896_s17 + $0xf8] sm:$0xf]  ;;  %v2842_v10 = vld [vmem:[%s3896_s17 + $0xd0] sm:$0xf] }
 0x1b9   : > { %1362 = vmatpush.bf16.msra.mxu2 %v2907_v1  ;;  %v2867_v9 = vor.u32 %v3253_v4, %v2866_v3  ;;  %v3247_v11 = vld [vmem:[%s3896_s17 + $0xe4] sm:$0xf0]  ;;  %v2859_v12 = vor.u32 %v3252_v8, %v2858_v7  ;;  %v3246_v14 = vld [vmem:[%s3896_s17 + $0xdc] sm:$0xf0]  ;;  %v3241_v17 = vld [vmem:[%s3896_s17 + $0xb4] sm:$0xf0] }
 0x1ba   : > { %v2834_v13 = vld [vmem:[%s3896_s17 + $0xc8] sm:$0xf]  ;;  %v2843_v15 = vor.u32 %v3247_v11, %v2842_v10  ;;  %v2818_v16 = vld [vmem:[%s3896_s17 + $0xa0] sm:$0xf]  ;;  %v2810_v19 = vld [vmem:[%s3896_s17 + $0x98] sm:$0xf] }
 0x1bb   : > { %1339 = vmatpush.bf16.msra.mxu0 %v2779_v27  ;;  %v2835_v18 = vor.u32 %v3246_v14, %v2834_v13  ;;  %v3240_v20 = vld [vmem:[%s3896_s17 + $0xac] sm:$0xf0]  ;;  %v2819_v21 = vor.u32 %v3241_v17, %v2818_v16  ;;  %v3235_v23 = vld [vmem:[%s3896_s17 + $0x84] sm:$0xf0]  ;;  %v3234_v26 = vld [vmem:[%s3896_s17 + $0x7c] sm:$0xf0] }
 0x1bc   : > { %1353 = vmatpush.bf16.msra.mxu1 %v2783_v31  ;;  %1380 = vmatpush.bf16.msra.mxu3 %v2815_v39  ;;  %v2794_v22 = vld [vmem:[%s3896_s17 + $0x70] sm:$0xf]  ;;  %v2811_v24 = vor.u32 %v3240_v20, %v2810_v19  ;;  %v2786_v25 = vld [vmem:[%s3896_s17 + $0x68] sm:$0xf]  ;;  %v2770_v28 = vld [vmem:[%s3896_s17 + $0x40] sm:$0xf] }
 0x1bd   : > { %1363 = vmatpush.bf16.msra.mxu2 %v2883_v5  ;;  %v2795_v27 = vor.u32 %v3235_v23, %v2794_v22  ;;  %v3229_v29 = vld [vmem:[%s3896_s17 + $0x54] sm:$0xf0]  ;;  %v2787_v30 = vor.u32 %v3234_v26, %v2786_v25  ;;  %v3228_v32 = vld [vmem:[%s3896_s17 + $0x4c] sm:$0xf0]  ;;  %v3223_v35 = vld [vmem:[%s3896_s17 + $0x24] sm:$0xf0] }
 0x1be   : > { %v2762_v31 = vld [vmem:[%s3896_s17 + $0x38] sm:$0xf]  ;;  %v2771_v33 = vor.u32 %v3229_v29, %v2770_v28  ;;  %v2746_v34 = vld [vmem:[%s3896_s17 + $0x10] sm:$0xf]  ;;  %v2738_v37 = vld [vmem:[%s3896_s17 + $0x8] sm:$0xf] }
 0x1bf   : > { %1340 = vmatpush.bf16.msra.mxu0 %v2755_v36  ;;  %v2763_v36 = vor.u32 %v3228_v32, %v2762_v31  ;;  %v3222_v38 = vld [vmem:[%s3896_s17 + $0x1c] sm:$0xf0]  ;;  %v2747_v39 = vor.u32 %v3223_v35, %v2746_v34  ;;  %v4061_v41 = vld [vmem:[%s3937_s6] sm:$0x3f]  ;;  %v3262_v13 = vld [vmem:[%s3896_s17 + $0x164] sm:$0xf] }
 0x1c0   : > { %1354 = vmatpush.bf16.msra.mxu1 %v2759_v40  ;;  %1381 = vmatpush.bf16.msra.mxu3 %v2791_v49  ;;  %v2739_v40 = vor.u32 %v3222_v38, %v2738_v37  ;;  %v1083_v42 = vperm.slane %v4061_v41, 1  ;;  %v1082_v43 = vperm.slane %v4061_v41, 0  ;;  %v1084_v60 = vperm.slane %v4061_v41, 2  ;;  %v1028_v4 = vld [vmem:[%s4417_s15] sm:$0x3]  ;;  %s4418_s4 = sld [smem:[#allocation24_spill]] }
 0x1c1   : > { %1364 = vmatpush.bf16.msra.mxu2 %v2859_v12  ;;  %v2916_v14 = vld [vmem:[%s3896_s17 + $0x178] sm:$0xf0]  ;;  %v2892_v17 = vld [vmem:[%s3896_s17 + $0x148] sm:$0xf0]  ;;  %v3250_v19 = vld [vmem:[%s3896_s17 + $0x104] sm:$0xf] }
 0x1c2   : > { %v2919_v16 = vor.u32 %v3262_v13, %v2916_v14  ;;  %v2868_v20 = vld [vmem:[%s3896_s17 + $0x118] sm:$0xf0]  ;;  %v3244_v22 = vld [vmem:[%s3896_s17 + $0xd4] sm:$0xf]  ;;  %v2844_v23 = vld [vmem:[%s3896_s17 + $0xe8] sm:$0xf0] }
 0x1c3   : > { %1341 = vmatpush.bf16.msra.mxu0 %v2731_v47  ;;  %v2847_v26 = vor.u32 %v3244_v22, %v2844_v23  ;;  %v2820_v28 = vld [vmem:[%s3896_s17 + $0xb8] sm:$0xf0]  ;;  %v3232_v32 = vld [vmem:[%s3896_s17 + $0x74] sm:$0xf]  ;;  %p3116_p10 = scmp.ne.s32.totalorder %s3774_s5, 1 }
 0x1c4   : > { %1355 = vmatpush.bf16.msra.mxu1 %v2735_v50  ;;  %1382 = vmatpush.bf16.msra.mxu3 %v2767_v58  ;;  %v1086_v50 = vperm.slane %v4061_v41, 4  ;;  %s4425_s27 = sld [smem:[#allocation30_spill]] (!%p3116_p10) }
 0x1c5   : > { %1365 = vmatpush.bf16.msra.mxu2 %v2835_v18  ;;  %s4427_s28 = sld [smem:[#allocation29_spill]] (!%p3116_p10) }
 0x1c6   : > { %1342 = vmatmul.bf16.vlgmr.msra.gmra.mxu0 %v4023_v57  ;;  %s4419_s3 = scalar_lea.vmem %s4418_s4, %s3919_s26  ;;  %s4428_s5 = sld [smem:[#allocation31_spill]] (!%p3116_p10) }
 0x1c7   : > { %1390 = vmatpush.bf16.msrb.mxu0 %v2915_v51  ;;  %1356 = vmatmul.bf16.vlgmr.msra.gmra.mxu1 %v4023_v57  ;;  %v1085_v51 = vperm.slane %v4061_v41, 3  ;;  %s4429_s1 = sld [smem:[#allocation34_spill]] (!%p3116_p10) }
 0x1c8   : > { %1383 = vmatpush.bf16.msra.mxu3 %v2743_v6  ;;  %v1029_v6 = vsub.f32 1.0, %v1028_v4  ;;  %1404 = vmatpush.bf16.msrb.mxu1 %v2919_v16 }
 0x1c9   : > { %1366 = vmatpush.bf16.msra.mxu2 %v2811_v24 }
 0x1ca   : > { %v1030_v7 = vmul.f32 -10000.0, %v1029_v6 }
 0x1cb   : > { %1391 = vmatpush.bf16.msrb.mxu0 %v2891_v62  ;;  %1384 = vmatmul.bf16.vlgmr.msra.gmra.mxu3 %v4023_v57 }
 0x1cc   : > { %v1439_v8 = vperm.slane %v1030_v7, 0  ;;  %v1555_v34 = vperm.slane %v1030_v7, 1 }
 0x1cd   : > { %1367 = vmatpush.bf16.msra.mxu2 %v2787_v30 }
 0x1cf   : > { %1392 = vmatpush.bf16.msrb.mxu0 %v2867_v9 }
 0x1d1   : > { %1368 = vmatpush.bf16.msra.mxu2 %v2763_v36 }
 0x1d3   : > { %1393 = vmatpush.bf16.msrb.mxu0 %v2843_v15  ;;  %v3256_v15 = vld [vmem:[%s3896_s17 + $0x134] sm:$0xf] }
 0x1d4   : > { %v2895_v18 = vor.u32 %v3256_v15, %v2892_v17 }
 0x1d5   : > { %1369 = vmatpush.bf16.msra.mxu2 %v2739_v40 }
 0x1d6   : > { %1405 = vmatpush.bf16.msrb.mxu1 %v2895_v18 }
 0x1d7   : > { %1394 = vmatpush.bf16.msrb.mxu0 %v2819_v21  ;;  %v2871_v21 = vor.u32 %v3250_v19, %v2868_v20 }
 0x1d8   : > { %1370 = vmatmul.bf16.vlgmr.msra.gmra.mxu2 %v4023_v57 }
 0x1da   : > { %1406 = vmatpush.bf16.msrb.mxu1 %v2871_v21 }
 0x1db   : > { %1395 = vmatpush.bf16.msrb.mxu0 %v2795_v27  ;;  %v3238_v27 = vld [vmem:[%s3896_s17 + $0xa4] sm:$0xf] }
 0x1dc   : > { %v2823_v31 = vor.u32 %v3238_v27, %v2820_v28  ;;  %v3281_v27 = vld [vmem:[%s3903_s25 + $0x78] sm:$0xff]  ;;  %v3272_v28 = vld [vmem:[%s3903_s25 + $0x30] sm:$0xff] }
 0x1de   : > { %1407 = vmatpush.bf16.msrb.mxu1 %v2847_v26  ;;  %v3273_v26 = vld [vmem:[%s3903_s25 + $0x38] sm:$0xff] }
 0x1df   : > { %1396 = vmatpush.bf16.msrb.mxu0 %v2771_v33  ;;  %v2796_v33 = vld [vmem:[%s3896_s17 + $0x88] sm:$0xf0] }
 0x1e0   : > { %v2799_v37 = vor.u32 %v3232_v32, %v2796_v33  ;;  %v3270_v32 = vld [vmem:[%s3903_s25 + $0x20] sm:$0xff]  ;;  %v3269_v33 = vld [vmem:[%s3903_s25 + $0x18] sm:$0xff] }
 0x1e2   : > { %1408 = vmatpush.bf16.msrb.mxu1 %v2823_v31  ;;  %v3279_v31 = vld [vmem:[%s3903_s25 + $0x68] sm:$0xff] }
 0x1e3   : > { %1397 = vmatpush.bf16.msrb.mxu0 %v2747_v39 }
 0x1e6   : > { %1398 = vmatmul.bf16.vlgmr.msrb.gmra.mxu0 %v4023_v57  ;;  %1409 = vmatpush.bf16.msrb.mxu1 %v2799_v37  ;;  %v3277_v37 = vld [vmem:[%s3903_s25 + $0x58] sm:$0xff] }
 0x1e7   : > { %1787 = vmatpush.bf16.msra.mxu0 %v3273_v26  ;;  %v3032_v26 = vld [vmem:[%s3909_s19 + $0x58] sm:$0xf0] }
 0x1eb   : > { %1788 = vmatpush.bf16.msra.mxu0 %v3272_v28  ;;  %v3022_v28 = vld [vmem:[%s3909_s19 + $0x40] sm:$0xf] }
 0x243   : > { %v1343_v44 = vpop.f32.mrf.mxu0 }
 0x244   : > { %v1357_v45 = vpop.f32.mrf.mxu1  ;;  %v1344_v47 = vadd.f32 %v1343_v44, %v1082_v43 }
 0x245   : > { %v1358_v46 = vadd.f32 %v1357_v45, %v1083_v42  ;;  %v3226_v45 = vld [vmem:[%s3896_s17 + $0x44] sm:$0xf] }
 0x247   : > { %1433 = vmatpush.xpose.msrb.mxu2 %v1358_v46  ;;  %v2772_v46 = vld [vmem:[%s3896_s17 + $0x58] sm:$0xf0] }
 0x24a   : > { %1434 = vmatmul.f32.vlgmr.msrb.gmra.mxu2 %v1344_v47  ;;  %v2775_v47 = vor.u32 %v3226_v45, %v2772_v46 }
 0x24b   : > { %v1345_v49 = vpop.f32.mrf.mxu0 }
 0x24c   : > { %v1359_v53 = vpop.f32.mrf.mxu1  ;;  %v1346_v1 = vadd.f32 %v1345_v49, %v1082_v43  ;;  %1410 = vmatpush.bf16.msrb.mxu1 %v2775_v47  ;;  %v3220_v49 = vld [vmem:[%s3896_s17 + $0x14] sm:$0xf] }
 0x24d   : > { %v1360_v58 = vadd.f32 %v1359_v53, %v1083_v42 }
 0x24e   : > { %v1385_v55 = vpop.f32.mrf.mxu3 }
 0x24f   : > { %v1386_v59 = vadd.f32 %v1385_v55, %v1085_v51 }
 0x256   : > { %v1387_v2 = vpop.f32.mrf.mxu3 }
 0x257   : > { %v1388_v3 = vadd.f32 %v1387_v2, %v1085_v51 }
 0x25b   : > { %v1371_v62 = vpop.f32.mrf.mxu2 }
 0x25c   : > { %v1372_v0 = vadd.f32 %v1371_v62, %v1084_v60 }
 0x25e   : > { %1471 = vmatpush.msrb.mxu3 %v1372_v0 }
 0x263   : > { %v1399_v54 = vpop.f32.mrf.mxu0  ;;  %v4073_v5 = vpop.f32.mrf.mxu2 }
 0x264   : > { %v1400_v56 = vadd.f32 %v1399_v54, %v1086_v50  ;;  %v1374_v17 = vadd.f32 %v4073_v5, %v1084_v60 }
 0x266   : > { %1492 = vmatpush.xpose.msra.mxu2 %v1400_v56 }
 0x269   : > { %1493 = vmatmul.f32.vlgmr.msra.gmra.mxu2 %v1386_v59 }
 0x26a   : > { %1549 = vmatpush.xpose.msrb.mxu2 %v1360_v58 }
 0x26b   : > { %v1401_v61 = vpop.f32.mrf.mxu0 }
 0x26c   : > { %v1402_v63 = vadd.f32 %v1401_v61, %v1086_v50  ;;  %v2748_v50 = vld [vmem:[%s3896_s17 + $0x28] sm:$0xf0] }
 0x26d   : > { %v2751_v51 = vor.u32 %v3220_v49, %v2748_v50 }
 0x26e   : > { %1607 = vmatpush.xpose.msra.mxu2 %v1402_v63 }
 0x26f   : > { %1411 = vmatpush.bf16.msrb.mxu1 %v2751_v51  ;;  %v3416_v51 = vld [vmem:[%s4419_s3] ss:$0 sm:$0xff] }
 0x271   : > { %1550 = vmatmul.f32.vlgmr.msrb.gmra.mxu2 %v1346_v1 }
 0x272   : > { %1412 = vmatmul.bf16.vlgmr.msrb.gmra.mxu1 %v4023_v57 }
 0x273   : > { %1801 = vmatpush.bf16.msra.mxu1 %v3281_v27 }
 0x279   : > { %1608 = vmatmul.f32.vlgmr.msra.gmra.mxu2 %v1388_v3 }
 0x2cd   : > { %v1435_v9 = vpop.f32.mrf.mxu2 }
 0x2ce   : > { %v1438_v10 = vmul.f32 0.125, %v1435_v9 }
 0x2d0   : > { %v1440_v11 = vadd.f32 %v1439_v8, %v1438_v10 }
 0x2d2   : > { %v1442_v12 = vsel %vm1441_vm7, %v1440_v11, -inf }
 0x2d3   : > { %1443 = vmax.xlane.f32.xlu0 %v1442_v12 }
 0x2ec   : > { %v1494_v24 = vpop.f32.mrf.mxu2 }
 0x2ed   : > { %v1497_v25 = vmul.f32 0.125, %v1494_v24 }
 0x2ef   : > { %v1498_v29 = vadd.f32 %v1497_v25, %v1439_v8  ;;  %v1413_v12 = vpop.f32.mrf.mxu1 }
 0x2f1   : > { %v1499_v30 = vsel %vm1441_vm7, %v1498_v29, -inf }
 0x2f2   : > { %1500 = vmax.xlane.f32.xlu0 %v1499_v30  ;;  %v3271_v30 = vld [vmem:[%s3903_s25 + $0x28] sm:$0xff] }
 0x2f3   : > { %1789 = vmatpush.bf16.msra.mxu0 %v3271_v30  ;;  %v3290_v30 = vld [vmem:[%s3909_s19 + $0x44] sm:$0xf] }
 0x2f4   : > { %v1551_v35 = vpop.f32.mrf.mxu2 }
 0x2f5   : > { %v1554_v36 = vmul.f32 0.125, %v1551_v35  ;;  %v3278_v35 = vld [vmem:[%s3903_s25 + $0x60] sm:$0xff] }
 0x2f7   : > { %v1556_v38 = vadd.f32 %v1555_v34, %v1554_v36  ;;  %v1415_v19 = vpop.f32.mrf.mxu1  ;;  %1790 = vmatpush.bf16.msra.mxu0 %v3270_v32  ;;  %v3267_v36 = vld [vmem:[%s3903_s25 + $0x8] sm:$0xff] }
 0x2f8   : > { %v3024_v32 = vld [vmem:[%s3909_s19 + $0x48] sm:$0xf0] }
 0x2f9   : > { %v1557_v39 = vsel %vm1441_vm7, %v1556_v38, -inf }
 0x2fa   : > { %1558 = vmax.xlane.f32.xlu1 %v1557_v39  ;;  %v3276_v39 = vld [vmem:[%s3903_s25 + $0x50] sm:$0xff] }
 0x2fb   : > { %1791 = vmatpush.bf16.msra.mxu0 %v3269_v33  ;;  %v3027_v33 = vor.u32 %v3290_v30, %v3024_v32  ;;  %v3302_v30 = vld [vmem:[%s3911_s21 + $0x20] sm:$0xff]  ;;  %v3301_v32 = vld [vmem:[%s3911_s21 + $0x18] sm:$0xff] }
 0x2fc   : > { %v1609_v40 = vpop.f32.mrf.mxu2 }
 0x2fd   : > { %v1612_v42 = vmul.f32 0.125, %v1609_v40  ;;  %v3275_v40 = vld [vmem:[%s3903_s25 + $0x48] sm:$0xff] }
 0x2ff   : > { %v1613_v43 = vadd.f32 %v1612_v42, %v1555_v34  ;;  %v3268_v34 = vld [vmem:[%s3903_s25 + $0x10] sm:$0xff]  ;;  %v3274_v42 = vld [vmem:[%s3903_s25 + $0x40] sm:$0xff] }
 0x300   : > { %1792 = vmatpush.bf16.msra.mxu0 %v3268_v34  ;;  %v3014_v34 = vld [vmem:[%s3909_s19 + $0x30] sm:$0xf] }
 0x301   : > { %v1614_v44 = vsel %vm1441_vm7, %v1613_v43, -inf }
 0x302   : > { %1615 = vmax.xlane.f32.xlu1 %v1614_v44 }
 0x304   : > { %1793 = vmatpush.bf16.msra.mxu0 %v3267_v36  ;;  %v3288_v36 = vld [vmem:[%s3909_s19 + $0x34] sm:$0xf] }
 0x346   : > { %v1444_v53 = vpop.xlane.xlu0 %1443 }
 0x347   : > { %v1445_v54 = vsub.f32 %v1440_v11, %v1444_v53  ;;  %v1087_v11 = vperm.slane %v4061_v41, 5 }
 0x349   : > { %v1446_v55 = vmul.f32 1.442695, %v1445_v54  ;;  %v1414_v13 = vadd.f32 %v1413_v12, %v1087_v11  ;;  %v1416_v21 = vadd.f32 %v1415_v19, %v1087_v11  ;;  %v3038_v19 = vld [vmem:[%s3909_s19 + $0x60] sm:$0xf] }
 0x34b   : > { %3422 = vpow2.f32 %v1446_v55  ;;  %1528 = vmatpush.msra.mxu3 %v1414_v13  ;;  %v3046_v13 = vld [vmem:[%s3909_s19 + $0x70] sm:$0xf] }
 0x351   : > { %v3423_v56 = vpop.eup %3422 }
 0x352   : > { %v1448_v58 = vsel %vm1441_vm7, %v3423_v56, 0.0 }
 0x353   : > { %1449 = vadd.xlane.f32.xlu2 %v1448_v58 }
 0x365   : > { %v1501_v59 = vpop.xlane.xlu0 %1500 }
 0x366   : > { %v1502_v61 = vsub.f32 %v1498_v29, %v1501_v59  ;;  %v3280_v29 = vld [vmem:[%s3903_s25 + $0x70] sm:$0xff] }
 0x367   : > { %1802 = vmatpush.bf16.msra.mxu1 %v3280_v29  ;;  %v3291_v29 = vld [vmem:[%s3909_s19 + $0x44] sm:$0xf0] }
 0x368   : > { %v1503_v62 = vmul.f32 1.442695, %v1502_v61 }
 0x36a   : > { %3424 = vpow2.f32 %v1503_v62 }
 0x36b   : > { %1803 = vmatpush.bf16.msra.mxu1 %v3279_v31  ;;  %v3023_v31 = vor.u32 %v3291_v29, %v3022_v28  ;;  %v3303_v28 = vld [vmem:[%s3911_s21 + $0x28] sm:$0xff] }
 0x36c   : > { %v3311_v29 = vld [vmem:[%s3911_s21 + $0x68] sm:$0xff] }
 0x36d   : > { %v1559_v63 = vpop.xlane.xlu1 %1558 }
 0x36e   : > { %v1560_v0 = vsub.f32 %v1556_v38, %v1559_v63  ;;  %v3266_v38 = vld [vmem:[%s3903_s25] sm:$0xff] }
 0x36f   : > { %1804 = vmatpush.bf16.msra.mxu1 %v3278_v35  ;;  %1794 = vmatpush.bf16.msra.mxu0 %v3266_v38  ;;  %v3289_v35 = vld [vmem:[%s3909_s19 + $0x34] sm:$0xf0]  ;;  %v3016_v38 = vld [vmem:[%s3909_s19 + $0x38] sm:$0xf0] }
 0x370   : > { %v3425_v1 = vpop.eup %3424  ;;  %v1561_v2 = vmul.f32 1.442695, %v1560_v0  ;;  %v3634_v0 = vmov 128.0  }
 0x371   : > { %v1505_v3 = vsel %vm1441_vm7, %v3425_v1, 0.0 }
 0x372   : > { %3426 = vpow2.f32 %v1561_v2  ;;  %1506 = vadd.xlane.f32.xlu2 %v1505_v3 }
 0x373   : > { %1805 = vmatpush.bf16.msra.mxu1 %v3277_v37  ;;  %v3015_v37 = vor.u32 %v3289_v35, %v3014_v34  ;;  %v3300_v34 = vld [vmem:[%s3911_s21 + $0x10] sm:$0xff] }
 0x374   : > { %v3308_v35 = vld [vmem:[%s3911_s21 + $0x50] sm:$0xff] }
 0x375   : > { %v1616_v57 = vpop.xlane.xlu1 %1615 }
 0x376   : > { %v1617_v4 = vsub.f32 %v1613_v43, %v1616_v57 }
 0x377   : > { %1806 = vmatpush.bf16.msra.mxu1 %v3276_v39  ;;  %v3019_v39 = vor.u32 %v3288_v36, %v3016_v38  ;;  %v3299_v36 = vld [vmem:[%s3911_s21 + $0x8] sm:$0xff]  ;;  %v1893_v38 = vld [vmem:[%s3943_s10] sm:$0x3] }
 0x378   : > { %v3427_v6 = vpop.eup %3426  ;;  %v1618_v7 = vmul.f32 1.442695, %v1617_v4 }
 0x379   : > { %v1563_v8 = vsel %vm1441_vm7, %v3427_v6, 0.0 }
 0x37a   : > { %3428 = vpow2.f32 %v1618_v7  ;;  %1564 = vadd.xlane.f32.xlu0 %v1563_v8 }
 0x37b   : > { %1807 = vmatpush.bf16.msra.mxu1 %v3275_v40  ;;  %v3006_v40 = vld [vmem:[%s3909_s19 + $0x20] sm:$0xf] }
 0x37f   : > { %1808 = vmatpush.bf16.msra.mxu1 %v3274_v42  ;;  %v3287_v42 = vld [vmem:[%s3909_s19 + $0x24] sm:$0xf0] }
 0x380   : > { %v3429_v9 = vpop.eup %3428 }
 0x381   : > { %v1620_v10 = vsel %vm1441_vm7, %v3429_v9, 0.0 }
 0x382   : > { %1621 = vadd.xlane.f32.xlu1 %v1620_v10 }
 0x3c6   : > { %v1450_v14 = vpop.xlane.xlu2 %1449 }
 0x3c7   : > { %3430 = vrcp.f32 %v1450_v14  ;;  %v3297_v14 = vld [vmem:[%s3909_s19 + $0x74] sm:$0xf0] }
 0x3cd   : > { %v3431_v15 = vpop.eup %3430 }
 0x3ce   : > { %v1452_v16 = vmul.f32 %v3431_v15, %v3423_v56  ;;  %v3296_v15 = vld [vmem:[%s3909_s19 + $0x74] sm:$0xf] }
 0x3d0   : > { %2920 = vmatmul.msk.f32.vlgmr.msrb.gmra.mxu3 %vm1441_vm7, %v1452_v16  ;;  %v3047_v16 = vor.u32 %v3297_v14, %v3046_v13 }
 0x3d1   : > { %1586 = vmatpush.msrb.mxu3 %v1374_v17  ;;  %v3048_v17 = vld [vmem:[%s3909_s19 + $0x78] sm:$0xf0] }
 0x3d2   : > { %1979 = vmatpush.bf16.msrb.mxu2 %v3047_v16 }
 0x3e5   : > { %v1507_v18 = vpop.xlane.xlu2 %1506 }
 0x3e6   : > { %3432 = vrcp.f32 %v1507_v18  ;;  %v3051_v18 = vor.u32 %v3296_v15, %v3048_v17 }
 0x3ec   : > { %v3433_v20 = vpop.eup %3432 }
 0x3ed   : > { %v1509_v22 = vmul.f32 %v3433_v20, %v3425_v1  ;;  %v1565_v23 = vpop.xlane.xlu0 %1564  ;;  %v3295_v20 = vld [vmem:[%s3909_s19 + $0x64] sm:$0xf0] }
 0x3ee   : > { %3434 = vrcp.f32 %v1565_v23  ;;  %v3040_v23 = vld [vmem:[%s3909_s19 + $0x68] sm:$0xf0] }
 0x3ef   : > { %2921 = vmatmul.msk.f32.vlgmr.msra.gmra.mxu3 %vm1441_vm7, %v1509_v22  ;;  %v3039_v22 = vor.u32 %v3295_v20, %v3038_v19  ;;  %v3417_v19 = vld [vmem:[%s4420_s20] ss:$0 sm:$0xff]  ;;  %s4426_s20 = sld [smem:[#allocation32_spill]] (!%p3116_p10) }
 0x3f0   : > { %1643 = vmatpush.msra.mxu3 %v1416_v21  ;;  %v3294_v21 = vld [vmem:[%s3909_s19 + $0x64] sm:$0xf] }
 0x3f1   : > { %1980 = vmatpush.bf16.msrb.mxu2 %v3039_v22 }
 0x3f4   : > { %v3435_v41 = vpop.eup %3434 }
 0x3f5   : > { %v1567_v60 = vmul.f32 %v3435_v41, %v3427_v6  ;;  %v1622_v5 = vpop.xlane.xlu1 %1621  ;;  %v3043_v41 = vor.u32 %v3294_v21, %v3040_v23 }
 0x3f6   : > { %3436 = vrcp.f32 %v1622_v5  ;;  %v3293_v5 = vld [vmem:[%s3909_s19 + $0x54] sm:$0xf0] }
 0x3f7   : > { %2922 = vmatmul.msk.f32.vlgmr.msrb.gmra.mxu3 %vm1441_vm7, %v1567_v60  ;;  %3438 = vrcp.f32 %v3634_v0  ;;  %v3030_v60 = vld [vmem:[%s3909_s19 + $0x50] sm:$0xf] }
 0x3f8   : > { %1993 = vmatpush.bf16.msrb.mxu3 %v3051_v18 }
 0x3fc   : > { %v3437_v24 = vpop.eup %3436  ;;  %1994 = vmatpush.bf16.msrb.mxu3 %v3043_v41 }
 0x3fd   : > { %v1624_v25 = vmul.f32 %v3437_v24, %v3429_v9  ;;  %v3439_v1 = vpop.eup %3438  ;;  %v3292_v24 = vld [vmem:[%s3909_s19 + $0x54] sm:$0xf] }
 0x3fe   : > { %v1824_v2 = vmul.f32 128.0, %v3439_v1  ;;  %vm1828_vm8 = vweird.f32 %v3439_v1  ;;  %v3035_v27 = vor.u32 %v3292_v24, %v3032_v26  ;;  %v3304_v26 = vld [vmem:[%s3911_s21 + $0x30] sm:$0xff] }
 0x3ff   : > { %2923 = vmatmul.msk.f32.vlgmr.msra.gmra.mxu3 %vm1441_vm7, %v1624_v25  ;;  %v3031_v25 = vor.u32 %v3293_v5, %v3030_v60 }
 0x400   : > { %v1825_v3 = vsub.f32 1.0, %v1824_v2  ;;  %1995 = vmatpush.bf16.msrb.mxu3 %v3035_v27  ;;  %v3312_v27 = vld [vmem:[%s3911_s21 + $0x70] sm:$0xff] }
 0x401   : > { %1981 = vmatpush.bf16.msrb.mxu2 %v3031_v25  ;;  %v3313_v25 = vld [vmem:[%s3911_s21 + $0x78] sm:$0xff] }
 0x402   : > { %v1826_v57 = vmul.f32 %v3439_v1, %v1825_v3  ;;  %2191 = vmatpush.bf16.msrb.mxu1 %v3313_v25 }
 0x404   : > { %v1827_v4 = vadd.f32 %v3439_v1, %v1826_v57  ;;  %1996 = vmatpush.bf16.msrb.mxu3 %v3027_v33  ;;  %v3309_v33 = vld [vmem:[%s3911_s21 + $0x58] sm:$0xff] }
 0x405   : > { %1982 = vmatpush.bf16.msrb.mxu2 %v3023_v31  ;;  %v3310_v31 = vld [vmem:[%s3911_s21 + $0x60] sm:$0xff] }
 0x406   : > { %2192 = vmatpush.bf16.msrb.mxu1 %v3312_v27 }
 0x408   : > { %1997 = vmatpush.bf16.msrb.mxu3 %v3019_v39  ;;  %v1895_v39 = vperm.slane %v1893_v38, 0 }
 0x409   : > { %1983 = vmatpush.bf16.msrb.mxu2 %v3015_v37  ;;  %v3307_v37 = vld [vmem:[%s3911_s21 + $0x48] sm:$0xff] }
 0x40a   : > { %2193 = vmatpush.bf16.msrb.mxu1 %v3311_v29 }
 0x40e   : > { %2194 = vmatpush.bf16.msrb.mxu1 %v3310_v31 }
 0x412   : > { %2195 = vmatpush.bf16.msrb.mxu1 %v3309_v33 }
 0x416   : > { %2196 = vmatpush.bf16.msrb.mxu1 %v3308_v35 }
 0x41a   : > { %2197 = vmatpush.bf16.msrb.mxu1 %v3307_v37 }
 0x453   : > { %v1473_v43 = vpop.f32.mrf.mxu3 }
 0x472   : > { %v1530_v44 = vpop.f32.mrf.mxu3 }
 0x47a   : > { %v1588_v45 = vpop.f32.mrf.mxu3 }
 0x47b   : > { %v1653_v46 = vpack.c.bf16 %v1588_v45, %v1473_v43  ;;  %v3286_v43 = vld [vmem:[%s3909_s19 + $0x24] sm:$0xf]  ;;  %v3008_v45 = vld [vmem:[%s3909_s19 + $0x28] sm:$0xf0] }
 0x47d   : > { %1795 = vmatmul.bf16.vlgmr.msra.gmra.mxu0 %v1653_v46  ;;  %v3011_v46 = vor.u32 %v3286_v43, %v3008_v45  ;;  %v3306_v43 = vld [vmem:[%s3911_s21 + $0x40] sm:$0xff] }
 0x47e   : > { %2198 = vmatpush.bf16.msrb.mxu1 %v3306_v43 }
 0x47f   : > { %1998 = vmatpush.bf16.msrb.mxu3 %v3011_v46 }
 0x482   : > { %v1645_v47 = vpop.f32.mrf.mxu3 }
 0x483   : > { %v1654_v49 = vpack.c.bf16 %v1645_v47, %v1530_v44  ;;  %v3007_v44 = vor.u32 %v3287_v42, %v3006_v40  ;;  %v2998_v47 = vld [vmem:[%s3909_s19 + $0x10] sm:$0xf]  ;;  %v1896_v40 = vperm.slane %v1893_v38, 1  ;;  %v3298_v42 = vld [vmem:[%s3911_s21] sm:$0xff] }
 0x485   : > { %1809 = vmatmul.bf16.vlgmr.msra.gmra.mxu1 %v1654_v49  ;;  %1984 = vmatpush.bf16.msrb.mxu2 %v3007_v44  ;;  %v3285_v49 = vld [vmem:[%s3909_s19 + $0x14] sm:$0xf0] }
 0x4fa   : > { %v1796_v50 = vpop.f32.mrf.mxu0 }
 0x4fb   : > { %v1797_v53 = vadd.f32 %v3416_v51, %v1796_v50  ;;  %v3284_v50 = vld [vmem:[%s3909_s19 + $0x14] sm:$0xf] }
 0x502   : > { %v1810_v54 = vpop.f32.mrf.mxu1  ;;  %v1798_v58 = vpop.f32.mrf.mxu0 }
 0x503   : > { %v1811_v55 = vadd.f32 %v1810_v54, %v1797_v53  ;;  %v1799_v59 = vadd.f32 %v3416_v51, %v1798_v58  ;;  %v2999_v53 = vor.u32 %v3285_v49, %v2998_v47  ;;  %v3000_v54 = vld [vmem:[%s3909_s19 + $0x18] sm:$0xf0] }
 0x505   : > { %v1815_v56 = vadd.f32 %v1811_v55, %v4013_v48  ;;  %v4131_v48 = vsel %vm1828_vm8, %v3439_v1, %v1827_v4  ;;  %v2990_v55 = vld [vmem:[%s3909_s19] sm:$0xf]  ;;  %1985 = vmatpush.bf16.msrb.mxu2 %v2999_v53 }
 0x507   : > { %1819 = vadd.xlane.f32.xlu2 %v1815_v56 }
 0x50a   : > { %v1812_v61 = vpop.f32.mrf.mxu1 }
 0x50b   : > { %v1813_v62 = vadd.f32 %v1812_v61, %v1799_v59  ;;  %v3003_v59 = vor.u32 %v3284_v50, %v3000_v54  ;;  %v3282_v61 = vld [vmem:[%s3909_s19 + $0x4] sm:$0xf] }
 0x50d   : > { %v1816_v63 = vadd.f32 %v1813_v62, %v4015_v52  ;;  %v2992_v62 = vld [vmem:[%s3909_s19 + $0x8] sm:$0xf0]  ;;  %1999 = vmatpush.bf16.msrb.mxu3 %v3003_v59 }
 0x50e   : > { %v2995_v1 = vor.u32 %v3282_v61, %v2992_v62 }
 0x50f   : > { %1821 = vadd.xlane.f32.xlu0 %v1816_v63 }
 0x511   : > { %2000 = vmatpush.bf16.msrb.mxu3 %v2995_v1 }
 0x57a   : > { %v1820_v6 = vpop.xlane.xlu2 %1819 }
 0x57b   : > { %v1830_v7 = vmul.f32 %v4131_v48, %v1820_v6 }
 0x57d   : > { %v4134_v8 = vsub.f32 %v1815_v56, %v1830_v7  ;;  %v3283_v56 = vld [vmem:[%s3909_s19 + $0x4] sm:$0xf0] }
 0x57f   : > { %v1834_v52 = vmul.f32 %v4134_v8, %v4134_v8 }
 0x581   : > { %1836 = vadd.xlane.f32.xlu1 %v1834_v52 }
 0x582   : > { %v1822_v9 = vpop.xlane.xlu0 %1821 }
 0x583   : > { %v1831_v10 = vmul.f32 %v4131_v48, %v1822_v9 }
 0x585   : > { %v4139_v11 = vsub.f32 %v1816_v63, %v1831_v10  ;;  %v2991_v63 = vor.u32 %v3283_v56, %v2990_v55 }
 0x587   : > { %v1835_v12 = vmul.f32 %v4139_v11, %v4139_v11  ;;  %1986 = vmatpush.bf16.msrb.mxu2 %v2991_v63 }
 0x589   : > { %1838 = vadd.xlane.f32.xlu2 %v1835_v12 }
 0x5f4   : > { %v1837_v51 = vpop.xlane.xlu1 %1836 }
 0x5f5   : > { %v1840_v58 = vmul.f32 %v1837_v51, %v4131_v48 }
 0x5f7   : > { %v1842_v0 = vadd.f32 1e-12, %v1840_v58 }
 0x5f9   : > { %3440 = vrsqrt.f32 %v1842_v0  ;;  %vm1850_vm10 = vweird.f32 %v1842_v0 }
 0x5fc   : > { %v1839_v2 = vpop.xlane.xlu2 %1838 }
 0x5fd   : > { %v1841_v3 = vmul.f32 %v1839_v2, %v4131_v48 }
 0x5ff   : > { %v3441_v57 = vpop.eup %3440  ;;  %v1843_v4 = vadd.f32 1e-12, %v1841_v3 }
 0x600   : > { %v1845_v6 = vmul.f32 %v3441_v57, %v1842_v0  ;;  %vm1851_vm9 = vweird.f32 %v3441_v57 }
 0x601   : > { %3442 = vrsqrt.f32 %v1843_v4  ;;  %vm1852_vm11 = vmor %vm1850_vm10, %vm1851_vm9  ;;  %vm1860_vm13 = vweird.f32 %v1843_v4 }
 0x602   : > { %v1846_v7 = vmul.f32 %v3441_v57, %v1845_v6 }
 0x604   : > { %v1847_v52 = vmul.f32 0.5, %v1846_v7 }
 0x606   : > { %v1848_v9 = vsub.f32 1.5, %v1847_v52 }
 0x607   : > { %v3443_v10 = vpop.eup %3442 }
 0x608   : > { %v1849_v12 = vmul.f32 %v3441_v57, %v1848_v9  ;;  %v1855_v13 = vmul.f32 %v3443_v10, %v1843_v4  ;;  %vm1861_vm12 = vweird.f32 %v3443_v10 }
 0x609   : > { %vm1862_vm14 = vmor %vm1860_vm13, %vm1861_vm12 }
 0x60a   : > { %v1856_v14 = vmul.f32 %v3443_v10, %v1855_v13  ;;  %v1853_v15 = vsel %vm1852_vm11, %v3441_v57, %v1849_v12 }
 0x60b   : > { %v1864_v18 = vmul.f32 %v1853_v15, %v4134_v8  ;;  %v3418_v8 = vld [vmem:[%s4421_s24] ss:$0 sm:$0xff] }
 0x60c   : > { %v1857_v16 = vmul.f32 0.5, %v1856_v14 }
 0x60d   : > { %v1869_v23 = vmul.f32 %v3417_v19, %v1864_v18 }
 0x60e   : > { %v1858_v17 = vsub.f32 1.5, %v1857_v16 }
 0x60f   : > { %v4189_v60 = vadd.f32 %v3418_v8, %v1869_v23 }
 0x610   : > { %v1859_v20 = vmul.f32 %v3443_v10, %v1858_v17 }
 0x612   : > { %v1863_v21 = vsel %vm1862_vm14, %v3443_v10, %v1859_v20 }
 0x613   : > { %v1865_v22 = vmul.f32 %v1863_v21, %v4139_v11  ;;  %v3305_v11 = vld [vmem:[%s3911_s21 + $0x38] sm:$0xff] }
 0x614   : > { %2177 = vmatpush.bf16.msrb.mxu0 %v3305_v11 }
 0x615   : > { %v1870_v41 = vmul.f32 %v3417_v19, %v1865_v22 }
 0x617   : > { %v4191_v5 = vadd.f32 %v3418_v8, %v1870_v41 }
 0x618   : > { %2178 = vmatpush.bf16.msrb.mxu0 %v3304_v26 }
 0x619   : > { %v1876_v24 = vpack.c.bf16 %v4191_v5, %v4189_v60 }
 0x61b   : > { %1987 = vmatmul.bf16.vlgmr.msrb.gmra.mxu2 %v1876_v24  ;;  %2001 = vmatmul.bf16.vlgmr.msrb.gmra.mxu3 %v1876_v24 }
 0x61c   : > { %2179 = vmatpush.bf16.msrb.mxu0 %v3303_v28  ;;  %v3419_v28 = vld [vmem:[%s950_s22] ss:$0 sm:$0xff]  ;;  %s4430_s22 = sld [smem:[#allocation33_spill]] (!%p3116_p10) }
 0x620   : > { %2180 = vmatpush.bf16.msrb.mxu0 %v3302_v30 }
 0x624   : > { %2181 = vmatpush.bf16.msrb.mxu0 %v3301_v32 }
 0x628   : > { %2182 = vmatpush.bf16.msrb.mxu0 %v3300_v34 }
 0x62c   : > { %2183 = vmatpush.bf16.msrb.mxu0 %v3299_v36 }
 0x630   : > { %2184 = vmatpush.bf16.msrb.mxu0 %v3298_v42 }
 0x69e   : > { %v1988_v44 = vpop.f32.mrf.mxu2  ;;  %v2002_v45 = vpop.f32.mrf.mxu3 }
 0x69f   : > { %v1989_v46 = vadd.f32 %v1988_v44, %v1895_v39  ;;  %v2003_v47 = vadd.f32 %v2002_v45, %v1896_v40 }
 0x6a1   : > { %v2011_v49 = vmul.f32 0.044715, %v1989_v46  ;;  %v2012_v50 = vmul.f32 0.044715, %v2003_v47  ;;  %v2007_v19 = vmul.f32 0.5, %v1989_v46  ;;  %v2008_v22 = vmul.f32 0.5, %v2003_v47 }
 0x6a3   : > { %v2015_v51 = vmul.f32 %v2011_v49, %v1989_v46  ;;  %v2016_v53 = vmul.f32 %v2012_v50, %v2003_v47 }
 0x6a5   : > { %v2019_v54 = vmul.f32 %v2015_v51, %v1989_v46  ;;  %v2020_v55 = vmul.f32 %v2016_v53, %v2003_v47 }
 0x6a6   : > { %v1990_v56 = vpop.f32.mrf.mxu2  ;;  %v2004_v58 = vpop.f32.mrf.mxu3 }
 0x6a7   : > { %v2023_v59 = vadd.f32 %v2019_v54, %v1989_v46  ;;  %v1991_v61 = vadd.f32 %v1990_v56, %v1895_v39  ;;  %v2005_v62 = vadd.f32 %v2004_v58, %v1896_v40  ;;  %v2024_v63 = vadd.f32 %v2020_v55, %v2003_v47 }
 0x6a9   : > { %v2013_v0 = vmul.f32 0.044715, %v1991_v61  ;;  %v2014_v1 = vmul.f32 0.044715, %v2005_v62  ;;  %v2027_v2 = vmul.f32 0.7978846, %v2023_v59 }
 0x6aa   : > { %v2028_v57 = vmul.f32 0.7978846, %v2024_v63  ;;  %v2009_v20 = vmul.f32 0.5, %v1991_v61  ;;  %v2010_v23 = vmul.f32 0.5, %v2005_v62 }
 0x6ab   : > { %v2017_v3 = vmul.f32 %v2013_v0, %v1991_v61  ;;  %v2018_v4 = vmul.f32 %v2014_v1, %v2005_v62  ;;  %3444 = vtanh.f32 %v2027_v2  ;;  %v3420_v0 = vld [vmem:[%s953_s7] ss:$0 sm:$0xff] }
 0x6ac   : > { %3446 = vtanh.f32 %v2028_v57  ;;  %v3421_v2 = vld [vmem:[%s956_s18] ss:$0 sm:$0xff]  ;;  %s4424_s18 = sld [smem:[#allocation28_spill]] (!%p3116_p10) }
 0x6ad   : > { %v2021_v6 = vmul.f32 %v2017_v3, %v1991_v61  ;;  %v2022_v7 = vmul.f32 %v2018_v4, %v2005_v62 }
 0x6af   : > { %v2025_v52 = vadd.f32 %v2021_v6, %v1991_v61  ;;  %v2026_v9 = vadd.f32 %v2022_v7, %v2005_v62 }
 0x6b1   : > { %v2029_v10 = vmul.f32 0.7978846, %v2025_v52  ;;  %v2030_v12 = vmul.f32 0.7978846, %v2026_v9  ;;  %v3445_v13 = vpop.eup %3444 }
 0x6b2   : > { %v3447_v14 = vpop.eup %3446  ;;  %v2035_v15 = vadd.f32 1.0, %v3445_v13 }
 0x6b3   : > { %3448 = vtanh.f32 %v2029_v10  ;;  %v2036_v17 = vadd.f32 1.0, %v3447_v14 }
 0x6b4   : > { %3450 = vtanh.f32 %v2030_v12  ;;  %v2039_v41 = vmul.f32 %v2035_v15, %v2007_v19 }
 0x6b5   : > { %v2040_v11 = vmul.f32 %v2036_v17, %v2008_v22 }
 0x6b9   : > { %v3449_v16 = vpop.eup %3448 }
 0x6ba   : > { %v3451_v18 = vpop.eup %3450  ;;  %v2037_v21 = vadd.f32 1.0, %v3449_v16 }
 0x6bb   : > { %v2038_v8 = vadd.f32 1.0, %v3451_v18 }
 0x6bc   : > { %v2041_v24 = vmul.f32 %v2037_v21, %v2009_v20 }
 0x6bd   : > { %v2042_v25 = vmul.f32 %v2038_v8, %v2010_v23 }
 0x6be   : > { %v2043_v26 = vpack.c.bf16 %v2041_v24, %v2039_v41 }
 0x6bf   : > { %v2044_v27 = vpack.c.bf16 %v2042_v25, %v2040_v11 }
 0x6c0   : > { %2185 = vmatmul.bf16.vlgmr.msrb.gmra.mxu0 %v2043_v26 }
 0x6c1   : > { %2199 = vmatmul.bf16.vlgmr.msrb.gmra.mxu1 %v2044_v27 }
 0x73d   : > { %v2186_v29 = vpop.f32.mrf.mxu0 }
 0x73e   : > { %v2187_v30 = vadd.f32 %v3419_v28, %v2186_v29  ;;  %v2200_v31 = vpop.f32.mrf.mxu1 }
 0x740   : > { %v2201_v32 = vadd.f32 %v2200_v31, %v2187_v30 }
 0x742   : > { %v2205_v33 = vadd.f32 %v2201_v32, %v4189_v60 }
 0x744   : > { %2209 = vadd.xlane.f32.xlu0 %v2205_v33 }
 0x745   : > { %v2188_v34 = vpop.f32.mrf.mxu0 }
 0x746   : > { %v2189_v35 = vadd.f32 %v3419_v28, %v2188_v34  ;;  %v2202_v36 = vpop.f32.mrf.mxu1 }
 0x748   : > { %v2203_v37 = vadd.f32 %v2202_v36, %v2189_v35 }
 0x74a   : > { %v2206_v38 = vadd.f32 %v2203_v37, %v4191_v5 }
 0x74c   : > { %2211 = vadd.xlane.f32.xlu1 %v2206_v38 }
 0x7b7   : > { %v2210_v39 = vpop.xlane.xlu0 %2209 }
 0x7b8   : > { %v2213_v40 = vmul.f32 %v2210_v39, %v4131_v48 }
 0x7ba   : > { %v2215_v42 = vsub.f32 %v2205_v33, %v2213_v40 }
 0x7bc   : > { %v2217_v43 = vmul.f32 %v2215_v42, %v2215_v42 }
 0x7be   : > { %2219 = vadd.xlane.f32.xlu2 %v2217_v43 }
 0x7bf   : > { %v2212_v44 = vpop.xlane.xlu1 %2211 }
 0x7c0   : > { %v2214_v45 = vmul.f32 %v2212_v44, %v4131_v48 }
 0x7c2   : > { %v2216_v46 = vsub.f32 %v2206_v38, %v2214_v45 }
 0x7c4   : > { %v2218_v47 = vmul.f32 %v2216_v46, %v2216_v46 }
 0x7c6   : > { %2221 = vadd.xlane.f32.xlu0 %v2218_v47 }
 0x831   : > { %v2220_v60 = vpop.xlane.xlu2 %2219 }
 0x832   : > { %v2223_v49 = vmul.f32 %v2220_v60, %v4131_v48 }
 0x834   : > { %v2225_v50 = vadd.f32 1e-12, %v2223_v49 }
 0x836   : > { %3452 = vrsqrt.f32 %v2225_v50  ;;  %vm2233_vm0 = vweird.f32 %v2225_v50 }
 0x839   : > { %v2222_v5 = vpop.xlane.xlu0 %2221 }
 0x83a   : > { %v2224_v51 = vmul.f32 %v2222_v5, %v4131_v48 }
 0x83c   : > { %v3453_v53 = vpop.eup %3452  ;;  %v2226_v54 = vadd.f32 1e-12, %v2224_v51 }
 0x83d   : > { %v2228_v55 = vmul.f32 %v3453_v53, %v2225_v50  ;;  %vm2234_vm15 = vweird.f32 %v3453_v53 }
 0x83e   : > { %3454 = vrsqrt.f32 %v2226_v54  ;;  %vm2235_vm1 = vmor %vm2233_vm0, %vm2234_vm15  ;;  %vm2243_vm3 = vweird.f32 %v2226_v54 }
 0x83f   : > { %v2229_v56 = vmul.f32 %v3453_v53, %v2228_v55 }
 0x841   : > { %v2230_v58 = vmul.f32 0.5, %v2229_v56 }
 0x843   : > { %v2231_v59 = vsub.f32 1.5, %v2230_v58 }
 0x844   : > { %v3455_v61 = vpop.eup %3454 }
 0x845   : > { %v2232_v62 = vmul.f32 %v3453_v53, %v2231_v59  ;;  %v2238_v63 = vmul.f32 %v3455_v61, %v2226_v54  ;;  %vm2244_vm2 = vweird.f32 %v3455_v61 }
 0x846   : > { %vm2245_vm4 = vmor %vm2243_vm3, %vm2244_vm2 }
 0x847   : > { %v2236_v48 = vsel %vm2235_vm1, %v3453_v53, %v2232_v62  ;;  %v2239_v1 = vmul.f32 %v3455_v61, %v2238_v63 }
 0x848   : > { %v2247_v3 = vmul.f32 %v2236_v48, %v2215_v42 }
 0x849   : > { %v2240_v57 = vmul.f32 0.5, %v2239_v1 }
 0x84a   : > { %v2252_v4 = vmul.f32 %v3420_v0, %v2247_v3 }
 0x84b   : > { %v2241_v6 = vsub.f32 1.5, %v2240_v57 }
 0x84c   : > { %v2257_v7 = vadd.f32 %v3421_v2, %v2252_v4 }
 0x84d   : > { %v2242_v52 = vmul.f32 %v3455_v61, %v2241_v6 }
 0x84e   : > { %2259 = vst [vmem:[#allocation2] sm:$0xff] %v2257_v7 }
 0x84f   : > { %v2246_v9 = vsel %vm2245_vm4, %v3455_v61, %v2242_v52 }
 0x850   : > { %v2248_v10 = vmul.f32 %v2246_v9, %v2216_v46 }
 0x852   : > { %v2253_v12 = vmul.f32 %v3420_v0, %v2248_v10  ;;  %2264 = sbr.rel (%p3116_p10) target bundleno = 2593 (0xa21), region = 132 }
 0x854   : > { %v2258_v13 = vadd.f32 %v3421_v2, %v2253_v12 }
 0x856   : > { %2260 = vst [vmem:[#allocation2 + $0x8] sm:$0xff] %v2258_v13 }
 0x857   : > { %v3321_v14 = vld [vmem:[%s4424_s18 + $0x38] sm:$0xff]  ;;  %v3320_v15 = vld [vmem:[%s4424_s18 + $0x30] sm:$0xff]  ;;  %v3319_v18 = vld [vmem:[%s4424_s18 + $0x28] sm:$0xff]  ;;  %v2265_v41 = vpack.c.bf16 %v2258_v13, %v2257_v7 }
 0x858   : > { %2334 = vmatpush.bf16.msra.mxu0 %v3321_v14  ;;  %v3329_v16 = vld [vmem:[%s4425_s27 + $0x38] sm:$0xff]  ;;  %v3328_v17 = vld [vmem:[%s4425_s27 + $0x30] sm:$0xff]  ;;  %v3327_v19 = vld [vmem:[%s4425_s27 + $0x28] sm:$0xff] }
 0x859   : > { %2419 = vmatpush.bf16.msra.mxu1 %v3329_v16  ;;  %v3318_v20 = vld [vmem:[%s4424_s18 + $0x20] sm:$0xff]  ;;  %v3317_v21 = vld [vmem:[%s4424_s18 + $0x18] sm:$0xff]  ;;  %v3316_v22 = vld [vmem:[%s4424_s18 + $0x10] sm:$0xff] }
 0x85a   : > { %v3315_v23 = vld [vmem:[%s4424_s18 + $0x8] sm:$0xff]  ;;  %v3314_v8 = vld [vmem:[%s4424_s18] sm:$0xff]  ;;  %v3325_v11 = vld [vmem:[%s4425_s27 + $0x18] sm:$0xff] }
 0x85b   : > { %v3326_v24 = vld [vmem:[%s4425_s27 + $0x20] sm:$0xff]  ;;  %v3324_v25 = vld [vmem:[%s4425_s27 + $0x10] sm:$0xff]  ;;  %v3323_v26 = vld [vmem:[%s4425_s27 + $0x8] sm:$0xff] }
 0x85c   : > { %2335 = vmatpush.bf16.msra.mxu0 %v3320_v15  ;;  %v3322_v27 = vld [vmem:[%s4425_s27] sm:$0xff]  ;;  %v3337_v28 = vld [vmem:[%s4426_s20 + $0x38] sm:$0xff]  ;;  %v3336_v29 = vld [vmem:[%s4426_s20 + $0x30] sm:$0xff] }
 0x85d   : > { %2420 = vmatpush.bf16.msra.mxu1 %v3328_v17  ;;  %2502 = vmatpush.bf16.msra.mxu2 %v3337_v28  ;;  %v3335_v30 = vld [vmem:[%s4426_s20 + $0x28] sm:$0xff]  ;;  %v3334_v31 = vld [vmem:[%s4426_s20 + $0x20] sm:$0xff]  ;;  %v3333_v34 = vld [vmem:[%s4426_s20 + $0x18] sm:$0xff] }
 0x85e   : > { %v3456_v33 = vld [vmem:[%s4427_s28] ss:$0 sm:$0xff]  ;;  %v3332_v42 = vld [vmem:[%s4426_s20 + $0x10] sm:$0xff]  ;;  %v3331_v43 = vld [vmem:[%s4426_s20 + $0x8] sm:$0xff]  ;;  %s4431_s28 = sld [smem:[#allocation35_spill]] }
 0x85f   : > { %v3330_v44 = vld [vmem:[%s4426_s20] sm:$0xff] }
 0x860   : > { %2336 = vmatpush.bf16.msra.mxu0 %v3319_v18  ;;  %v3457_v45 = vld [vmem:[%s4428_s5] ss:$0 sm:$0xff] }
 0x861   : > { %2421 = vmatpush.bf16.msra.mxu1 %v3327_v19  ;;  %2503 = vmatpush.bf16.msra.mxu2 %v3336_v29  ;;  %v3458_v5 = vld [vmem:[%s4430_s22] ss:$0 sm:$0xff] }
 0x864   : > { %2337 = vmatpush.bf16.msra.mxu0 %v3318_v20 }
 0x865   : > { %2422 = vmatpush.bf16.msra.mxu1 %v3326_v24  ;;  %2504 = vmatpush.bf16.msra.mxu2 %v3335_v30 }
 0x868   : > { %2338 = vmatpush.bf16.msra.mxu0 %v3317_v21 }
 0x869   : > { %2423 = vmatpush.bf16.msra.mxu1 %v3325_v11  ;;  %2505 = vmatpush.bf16.msra.mxu2 %v3334_v31 }
 0x86c   : > { %2339 = vmatpush.bf16.msra.mxu0 %v3316_v22 }
 0x86d   : > { %2424 = vmatpush.bf16.msra.mxu1 %v3324_v25  ;;  %2506 = vmatpush.bf16.msra.mxu2 %v3333_v34 }
 0x870   : > { %2340 = vmatpush.bf16.msra.mxu0 %v3315_v23 }
 0x871   : > { %2425 = vmatpush.bf16.msra.mxu1 %v3323_v26  ;;  %2507 = vmatpush.bf16.msra.mxu2 %v3332_v42 }
 0x874   : > { %2341 = vmatpush.bf16.msra.mxu0 %v3314_v8 }
 0x875   : > { %2426 = vmatpush.bf16.msra.mxu1 %v3322_v27  ;;  %2508 = vmatpush.bf16.msra.mxu2 %v3331_v43 }
 0x877   : > { %2342 = vmatmul.bf16.vlgmr.msra.gmra.mxu0 %v2265_v41 }
 0x879   : > { %2509 = vmatpush.bf16.msra.mxu2 %v3330_v44 }
 0x8f4   : > { %v2343_v32 = vpop.f32.mrf.mxu0 }
 0x8f5   : > { %v2344_v35 = vadd.f32 %v3456_v33, %v2343_v32 }
 0x8f7   : > { %3459 = vtanh.f32 %v2344_v35 }
 0x8fc   : > { %v2345_v36 = vpop.f32.mrf.mxu0 }
 0x8fd   : > { %v2346_v37 = vadd.f32 %v3456_v33, %v2345_v36  ;;  %v3460_v38 = vpop.eup %3459 }
 0x8ff   : > { %3461 = vtanh.f32 %v2346_v37 }
 0x905   : > { %v3462_v39 = vpop.eup %3461 }
 0x906   : > { %v2350_v40 = vpack.c.bf16 %v3462_v39, %v3460_v38 }
 0x908   : > { %2427 = vmatmul.bf16.vlgmr.msra.gmra.mxu1 %v2350_v40 }
 0x985   : > { %v2428_v46 = vpop.f32.mrf.mxu1 }
 0x986   : > { %v2429_v47 = vadd.f32 %v3457_v45, %v2428_v46 }
 0x988   : > { %2516 = vst [vmem:[%s4429_s1] sm:$0xff] %v2429_v47 }
 0x98d   : > { %v2430_v60 = vpop.f32.mrf.mxu1 }
 0x98e   : > { %v2431_v49 = vadd.f32 %v3457_v45, %v2430_v60 }
 0x990   : > { %2517 = vst [vmem:[%s4429_s1 + $0x8] sm:$0xff] %v2431_v49  ;;  %v2433_v50 = vpack.c.bf16 %v2431_v49, %v2429_v47 }
 0x992   : > { %2510 = vmatmul.bf16.vlgmr.msra.gmra.mxu2 %v2433_v50 }
 0xa15   : > { %v2511_v51 = vpop.f32.mrf.mxu2 }
 0xa16   : > { %v2512_v53 = vadd.f32 %v3458_v5, %v2511_v51 }
 0xa18   : > { %2518 = vst [vmem:[%s4431_s28] sm:$0xff] %v2512_v53 }
 0xa1d   : > { %v2513_v54 = vpop.f32.mrf.mxu2 }
 0xa1e   : > { %v2514_v55 = vadd.f32 %v3458_v5, %v2513_v54 }
 0xa20   : > { %2519 = vst [vmem:[%s4431_s28 + $0x8] sm:$0xff] %v2514_v55 }
 0xa21 PF: > { %s4432_s25 = sld [smem:[#allocation15_spill]]  ;;  %s4435_s4 = smov %s3617_s30 }
 0xa22   : > { %s4433_s26 = sld [smem:[#allocation14_spill]] }
 0xa23   : > { %s4434_s24 = sld [smem:[#allocation16_spill]] }
 0xa27   : > { %p40_p5 = scmp.ge.s32.totalorder %s4432_s25, 4  }
 0xa28   : > { %s4436_s30 = smov %s4433_s26 }
 0xa29   :  { %42 = sbr.rel (!%p40_p5) target bundleno = 27 (0x1b), region = 221 }
 0xa2e   :  { %2537 = vsyncpa [#allocation5], 1 }
 0xa2f   :  { %2539 = vsyncpa [#allocation5 + $0x1], 1 }
 0xa30   :  { %2540 = vsyncpa [#allocation7], 1 }
 0xa31   :  { %2542 = vsyncpa [#allocation7 + $0x1], 1 }
 0xa32   :  { %2543 = vsyncpa [#allocation10], 1 }
 0xa33   :  { %2545 = vsyncpa [#allocation10 + $0x1], 1 }

</bundles_post_ra>
